<compile_context>
chip_gen: v7x
topology: tpu7x:2x2x1
jax: 0.10.0
libtpu: 0.0.40
codegen_flags: <defaults>
</compile_context>

<pallas_src>
import functools

import jax
import jax.numpy as jnp
from jax.experimental import pallas as pl
from jax.experimental.pallas import tpu as pltpu

BN_EPS = 1e-5
LANES = 128


def _vmem_limit_bytes():
    # Re-derive the scoped-VMEM budget from the actual chip (64 MiB on v7x,
    # 128 MiB on v5e/v6e); leave 25% headroom for Mosaic's own scratch.
    try:
        cap = int(pltpu.get_tpu_info().vmem_capacity_bytes)
    except Exception:
        cap = 64 * 1024 * 1024
    return (cap * 3) // 4


_VMEM_LIMIT = _vmem_limit_bytes()


def _pad_to(n, m):
    return ((n + m - 1) // m) * m


# ---------------------------- Pallas kernels ------------------------------- #

def _conv_relu_stats_kernel(x_ref, w_ref, b_ref, y_ref, sum_ref, ssq_ref, *, k, s, Wo):
    """Conv (H-tap accumulation; W-taps live in the lane/K dim) + bias + ReLU
    for one image, plus per-image channel sum / sum-of-squares partials."""
    _, n_rows, c_pad = y_ref.shape                     # (1, Ho*Wo, Cpad)
    acc = jnp.zeros((n_rows, c_pad), jnp.float32)
    for i in range(k):                                  # k H-taps, unrolled
        xt = x_ref[0, i % s, pl.ds((i // s) * Wo, n_rows), :]   # (Ho*Wo, k*Cin) bf16
        acc = acc + jnp.dot(xt, w_ref[i], preferred_element_type=jnp.float32)
    y = jnp.maximum(acc + b_ref[...], 0.0)              # bias + ReLU in f32
    y_ref[0] = y
    sum_ref[0] = jnp.sum(y, axis=0, keepdims=True)
    ssq_ref[0] = jnp.sum(y * y, axis=0, keepdims=True)


def _bn_apply_kernel(y_ref, scale_ref, shift_ref, o_ref):
    # Lane-dense per-channel affine (BatchNorm apply), cast to bf16 for the
    # next layer's MXU inputs.
    o_ref[0] = (y_ref[0] * scale_ref[...] + shift_ref[...]).astype(o_ref.dtype)


def _linear_kernel(x_ref, w_ref, b_ref, o_ref, acc_ref):
    kk = pl.program_id(0)

    @pl.when(kk == 0)
    def _init():
        acc_ref[...] = jnp.zeros_like(acc_ref)

    acc_ref[...] += jnp.dot(x_ref[...], w_ref[...], preferred_element_type=jnp.float32)

    @pl.when(kk == pl.num_programs(0) - 1)
    def _finalize():
        o_ref[...] = acc_ref[...] + b_ref[...]


# ------------------------------- wrappers ----------------------------------- #

def _conv_relu_bn_layer(x, w_tap, b_pad, gamma_pad, beta_pad, k, s):
    """x: (N, H, W, Cin) bf16.  Returns ((N, Ho*Wo, Cpad) bf16, (Ho, Wo))."""
    N, H, W, Cin = x.shape
    Cpad = w_tap.shape[-1]
    p = (k - 1) // 2
    Ho = (H + 2 * p - k) // s + 1
    Wo = (W + 2 * p - k) // s + 1
    Hq = Ho + (k - 1) // s          # rows needed per stride phase
    Hp2 = s * Hq
    HoWo = Ho * Wo
    KC = k * Cin

    # --- cheap XLA layout glue (one pass, only k x blowup along W) ---
    pad_bottom = max(Hp2 - H - p, 0)
    xp = jnp.pad(x, ((0, 0), (p, pad_bottom), (p, p), (0, 0)))[:, :Hp2]
    # W-direction taps folded into the lane dim: (N, Hp2, Wo, k*Cin)
    xw = jnp.concatenate([xp[:, :, j:j + s * Wo:s, :] for j in range(k)], axis=-1)
    # stride-phase split along H so every kernel tap is a contiguous 2-D slice
    xph = (xw.reshape(N, Hq, s, Wo, KC)
             .transpose(0, 2, 1, 3, 4)
             .reshape(N, s, Hq * Wo, KC))

    kern = functools.partial(_conv_relu_stats_kernel, k=k, s=s, Wo=Wo)
    y, psum, pssq = pl.pallas_call(
        kern,
        grid=(N,),
        in_specs=[
            pl.BlockSpec((1, s, Hq * Wo, KC), lambda n: (n, 0, 0, 0)),
            pl.BlockSpec((k, KC, Cpad), lambda n: (0, 0, 0)),
            pl.BlockSpec((1, Cpad), lambda n: (0, 0)),
        ],
        out_specs=[
            pl.BlockSpec((1, HoWo, Cpad), lambda n: (n, 0, 0)),
            pl.BlockSpec((1, 1, Cpad), lambda n: (n, 0, 0)),
            pl.BlockSpec((1, 1, Cpad), lambda n: (n, 0, 0)),
        ],
        out_shape=[
            jax.ShapeDtypeStruct((N, HoWo, Cpad), jnp.float32),
            jax.ShapeDtypeStruct((N, 1, Cpad), jnp.float32),
            jax.ShapeDtypeStruct((N, 1, Cpad), jnp.float32),
        ],
        compiler_params=pltpu.CompilerParams(
            dimension_semantics=("parallel",),
            vmem_limit_bytes=_VMEM_LIMIT),
    )(xph, w_tap, b_pad)

    # --- BatchNorm batch statistics (training mode, biased variance) ---
    cnt = float(N * HoWo)
    mean = jnp.sum(psum[:, 0, :], axis=0) / cnt
    var = jnp.maximum(jnp.sum(pssq[:, 0, :], axis=0) / cnt - mean * mean, 0.0)
    inv = jax.lax.rsqrt(var + BN_EPS)
    scale = (gamma_pad * inv).reshape(1, Cpad)
    shift = (beta_pad - mean * gamma_pad * inv).reshape(1, Cpad)

    out = pl.pallas_call(
        _bn_apply_kernel,
        grid=(N,),
        in_specs=[
            pl.BlockSpec((1, HoWo, Cpad), lambda n: (n, 0, 0)),
            pl.BlockSpec((1, Cpad), lambda n: (0, 0)),
            pl.BlockSpec((1, Cpad), lambda n: (0, 0)),
        ],
        out_specs=pl.BlockSpec((1, HoWo, Cpad), lambda n: (n, 0, 0)),
        out_shape=jax.ShapeDtypeStruct((N, HoWo, Cpad), jnp.bfloat16),
        compiler_params=pltpu.CompilerParams(
            dimension_semantics=("parallel",),
            vmem_limit_bytes=_VMEM_LIMIT),
    )(y, scale, shift)
    return out, (Ho, Wo)


def _largest_k_tile(F, cap=4096):
    # largest multiple-of-128 divisor of F that is <= cap
    best, d = LANES, LANES
    while d <= min(F, cap):
        if F % d == 0:
            best = d
        d += LANES
    return best


def _linear(x, w, b):
    N, F = x.shape
    Lpad = w.shape[1]
    tk = _largest_k_tile(F)
    return pl.pallas_call(
        _linear_kernel,
        grid=(F // tk,),
        in_specs=[
            pl.BlockSpec((N, tk), lambda kk: (0, kk)),
            pl.BlockSpec((tk, Lpad), lambda kk: (kk, 0)),
            pl.BlockSpec((1, Lpad), lambda kk: (0, 0)),
        ],
        out_specs=pl.BlockSpec((N, Lpad), lambda kk: (0, 0)),
        out_shape=jax.ShapeDtypeStruct((N, Lpad), jnp.float32),
        scratch_shapes=[pltpu.VMEM((N, Lpad), jnp.float32)],
        compiler_params=pltpu.CompilerParams(
            dimension_semantics=("arbitrary",),
            vmem_limit_bytes=_VMEM_LIMIT),
    )(x, w, b)


class ConvolutionalEncoderPallas:
    """Mirrors ConvolutionalEncoder.forward: conv stack -> flatten -> linear."""

    def __init__(self, input_shape, convolutional_filters, convolutional_kernels,
                 convolutional_strides, latent_space_dimension=2, seed=0):
        self.input_shape = input_shape            # (C, H, W)
        self.filters = tuple(convolutional_filters)
        self.kernels = tuple(convolutional_kernels)
        self.strides = tuple(convolutional_strides)
        self.latent_dim = latent_space_dimension

        key = jax.random.PRNGKey(seed)
        self.conv_params = []
        in_c, H, W = input_shape
        for f, k, s in zip(self.filters, self.kernels, self.strides):
            key, kw_, kb_ = jax.random.split(key, 3)
            fan_in = in_c * k * k
            bound = 1.0 / (fan_in ** 0.5)
            wgt = jax.random.uniform(kw_, (f, in_c, k, k), jnp.float32, -bound, bound)
            b = jax.random.uniform(kb_, (f,), jnp.float32, -bound, bound)
            c_pad = _pad_to(f, LANES)
            # (Cout, Cin, KH, KW) -> (KH, KW*Cin, Cpad), matching the kernel's
            # lane layout (W-tap major, Cin minor), zero-padded to 128 lanes.
            w_tap = jnp.transpose(wgt, (2, 3, 1, 0)).reshape(k, k * in_c, f)
            w_tap = jnp.pad(w_tap, ((0, 0), (0, 0), (0, c_pad - f))).astype(jnp.bfloat16)
            b_pad = jnp.pad(b, (0, c_pad - f)).reshape(1, c_pad)
            gamma_pad = jnp.pad(jnp.ones((f,), jnp.float32), (0, c_pad - f))
            beta_pad = jnp.zeros((c_pad,), jnp.float32)
            self.conv_params.append((w_tap, b_pad, gamma_pad, beta_pad, f, c_pad))
            pad = (k - 1) // 2
            H = (H + 2 * pad - k) // s + 1
            W = (W + 2 * pad - k) // s + 1
            in_c = f

        self.shape_before_bottleneck = (in_c, H, W)
        self.shape_flattened = in_c * H * W

        # Linear: fold the PyTorch NCHW flatten order and the lane padding into
        # the weight once at init (rows permuted to (h, w, c)-order, zero rows
        # for padded channels, latent dim padded to 128 lanes).
        key, kw_, kb_ = jax.random.split(key, 3)
        bound = 1.0 / (self.shape_flattened ** 0.5)
        lin_w = jax.random.uniform(kw_, (self.shape_flattened, self.latent_dim),
                                   jnp.float32, -bound, bound)
        lin_b = jax.random.uniform(kb_, (self.latent_dim,), jnp.float32, -bound, bound)
        c_last, c_pad_last = in_c, _pad_to(in_c, LANES)
        l_pad = _pad_to(self.latent_dim, LANES)
        w4 = lin_w.reshape(c_last, H, W, self.latent_dim)     # rows in NCHW flatten order
        w4 = jnp.transpose(w4, (1, 2, 0, 3))                  # -> (H, W, C, L): NHWC order
        w4 = jnp.pad(w4, ((0, 0), (0, 0), (0, c_pad_last - c_last),
                          (0, l_pad - self.latent_dim)))
        self.lin_w = w4.reshape(H * W * c_pad_last, l_pad).astype(jnp.bfloat16)
        self.lin_b = jnp.pad(lin_b, (0, l_pad - self.latent_dim)).reshape(1, l_pad)

    def __call__(self, x_nchw):
        x = jnp.transpose(x_nchw, (0, 2, 3, 1)).astype(jnp.bfloat16)   # NCHW -> NHWC bf16
        n = x.shape[0]
        n_layers = len(self.conv_params)
        feat = None
        for idx, ((w_tap, b_pad, gamma_pad, beta_pad, cout, _c_pad), k, s) in enumerate(
                zip(self.conv_params, self.kernels, self.strides)):
            out, (Ho, Wo) = _conv_relu_bn_layer(x, w_tap, b_pad, gamma_pad, beta_pad, k, s)
            if idx + 1 < n_layers:
                x = out[..., :cout].reshape(n, Ho, Wo, cout)   # next layer's NHWC input
            else:
                feat = out                                      # (N, Ho*Wo, Cpad) bf16
        # Flatten is a pure reshape: the NCHW flatten permutation (and the
        # channel padding) is baked into lin_w, so no transpose / lane slice.
        z = _linear(feat.reshape(n, -1), self.lin_w, self.lin_b)
        return z[:, :self.latent_dim]


if __name__ == "__main__":
    # Small, module-consistent config: input (C=4, H=16, W=16), 2 conv layers.
    input_shape = (4, 16, 16)
    filters = (8, 16)
    kernels = (3, 3)
    strides = (2, 2)
    latent = 2
    batch = 2

    enc = ConvolutionalEncoderPallas(input_shape, filters, kernels, strides,
                                     latent_space_dimension=latent, seed=0)

    x = jax.random.normal(jax.random.PRNGKey(0), (batch, *input_shape), jnp.float32)

    @jax.jit
    def forward(inp):
        return enc(inp)

    out = jax.block_until_ready(forward(x))
    assert out.shape == (batch, latent), out.shape
    assert bool(jnp.all(jnp.isfinite(out)))
    print("KERNEL_OK")
</pallas_src>

<mosaic_0001>
module attributes {stable_mosaic.version = 11 : i64} {
  func.func @_conv_relu_stats_kernel(%arg0: i32, %arg1: memref<1x2x72x12xbf16, #tpu.memory_space<vmem>>, %arg2: memref<3x12x128xbf16, #tpu.memory_space<vmem>>, %arg3: memref<1x128xf32, #tpu.memory_space<vmem>>, %arg4: memref<1x64x128xf32, #tpu.memory_space<vmem>>, %arg5: memref<1x1x128xf32, #tpu.memory_space<vmem>>, %arg6: memref<1x1x128xf32, #tpu.memory_space<vmem>>) attributes {dimension_semantics = [#tpu.dimension_semantics<parallel>], iteration_bounds = array<i64: 2>, scalar_prefetch = 0 : i64, scratch_operands = 0 : i64, tpu.core_type = #tpu.core_type<tc>, window_params = [{transform_indices = @transform_0, window_bounds = array<i64: 1, 2, 72, 12>}, {pipeline_mode = #tpu.pipeline_mode<synchronous>, transform_indices = @transform_1, window_bounds = array<i64: 3, 12, 128>}, {pipeline_mode = #tpu.pipeline_mode<synchronous>, transform_indices = @transform_2, window_bounds = array<i64: 1, 128>}, {transform_indices = @transform_3, window_bounds = array<i64: 1, 64, 128>}, {transform_indices = @transform_4, window_bounds = array<i64: 1, 1, 128>}, {transform_indices = @transform_5, window_bounds = array<i64: 1, 1, 128>}]} {
    %cst = arith.constant 0.000000e+00 : f32
    %0 = vector.broadcast %cst : f32 to vector<64x128xf32>
    %c0 = arith.constant 0 : index
    %c0_0 = arith.constant 0 : index
    %c0_1 = arith.constant 0 : index
    %c0_2 = arith.constant 0 : index
    %1 = vector.load %arg1[%c0, %c0_0, %c0_1, %c0_2] : memref<1x2x72x12xbf16, #tpu.memory_space<vmem>>, vector<1x1x64x12xbf16>
    %2 = vector.shape_cast %1 : vector<1x1x64x12xbf16> to vector<64x12xbf16>
    %c0_3 = arith.constant 0 : index
    %c0_4 = arith.constant 0 : index
    %c0_5 = arith.constant 0 : index
    %3 = vector.load %arg2[%c0_3, %c0_4, %c0_5] : memref<3x12x128xbf16, #tpu.memory_space<vmem>>, vector<1x12x128xbf16>
    %4 = vector.shape_cast %3 : vector<1x12x128xbf16> to vector<12x128xbf16>
    %cst_6 = arith.constant dense<0.000000e+00> : vector<64x128xf32>
    %5 = tpu.matmul %2, %4, %cst_6 {dimension_numbers = #tpu.dot_dimension_numbers<[1], [0], [0], [1], [0, 0, 1, 1], [], []>} : vector<64x12xbf16>, vector<12x128xbf16>, vector<64x128xf32> -> vector<64x128xf32>
    %6 = arith.addf %0, %5 : vector<64x128xf32>
    %c0_7 = arith.constant 0 : index
    %c1 = arith.constant 1 : index
    %c0_8 = arith.constant 0 : index
    %c0_9 = arith.constant 0 : index
    %7 = vector.load %arg1[%c0_7, %c1, %c0_8, %c0_9] : memref<1x2x72x12xbf16, #tpu.memory_space<vmem>>, vector<1x1x64x12xbf16>
    %8 = vector.shape_cast %7 : vector<1x1x64x12xbf16> to vector<64x12xbf16>
    %c1_10 = arith.constant 1 : index
    %c0_11 = arith.constant 0 : index
    %c0_12 = arith.constant 0 : index
    %9 = vector.load %arg2[%c1_10, %c0_11, %c0_12] : memref<3x12x128xbf16, #tpu.memory_space<vmem>>, vector<1x12x128xbf16>
    %10 = vector.shape_cast %9 : vector<1x12x128xbf16> to vector<12x128xbf16>
    %cst_13 = arith.constant dense<0.000000e+00> : vector<64x128xf32>
    %11 = tpu.matmul %8, %10, %cst_13 {dimension_numbers = #tpu.dot_dimension_numbers<[1], [0], [0], [1], [0, 0, 1, 1], [], []>} : vector<64x12xbf16>, vector<12x128xbf16>, vector<64x128xf32> -> vector<64x128xf32>
    %12 = arith.addf %6, %11 : vector<64x128xf32>
    %c0_14 = arith.constant 0 : index
    %c0_15 = arith.constant 0 : index
    %c8 = arith.constant 8 : index
    %c0_16 = arith.constant 0 : index
    %13 = vector.load %arg1[%c0_14, %c0_15, %c8, %c0_16] : memref<1x2x72x12xbf16, #tpu.memory_space<vmem>>, vector<1x1x64x12xbf16>
    %14 = vector.shape_cast %13 : vector<1x1x64x12xbf16> to vector<64x12xbf16>
    %c2 = arith.constant 2 : index
    %c0_17 = arith.constant 0 : index
    %c0_18 = arith.constant 0 : index
    %15 = vector.load %arg2[%c2, %c0_17, %c0_18] : memref<3x12x128xbf16, #tpu.memory_space<vmem>>, vector<1x12x128xbf16>
    %16 = vector.shape_cast %15 : vector<1x12x128xbf16> to vector<12x128xbf16>
    %cst_19 = arith.constant dense<0.000000e+00> : vector<64x128xf32>
    %17 = tpu.matmul %14, %16, %cst_19 {dimension_numbers = #tpu.dot_dimension_numbers<[1], [0], [0], [1], [0, 0, 1, 1], [], []>} : vector<64x12xbf16>, vector<12x128xbf16>, vector<64x128xf32> -> vector<64x128xf32>
    %18 = arith.addf %12, %17 : vector<64x128xf32>
    %c0_20 = arith.constant 0 : index
    %c0_21 = arith.constant 0 : index
    %19 = vector.load %arg3[%c0_20, %c0_21] : memref<1x128xf32, #tpu.memory_space<vmem>>, vector<1x128xf32>
    %20 = vector.broadcast %19 : vector<1x128xf32> to vector<64x128xf32>
    %21 = arith.addf %18, %20 : vector<64x128xf32>
    %cst_22 = arith.constant 0.000000e+00 : f32
    %22 = vector.broadcast %cst_22 : f32 to vector<64x128xf32>
    %23 = arith.maximumf %21, %22 : vector<64x128xf32>
    %c0_23 = arith.constant 0 : index
    %c0_24 = arith.constant 0 : index
    %c0_25 = arith.constant 0 : index
    %24 = vector.load %arg4[%c0_23, %c0_24, %c0_25] : memref<1x64x128xf32, #tpu.memory_space<vmem>>, vector<1x64x128xf32>
    %25 = vector.shape_cast %24 : vector<1x64x128xf32> to vector<64x128xf32>
    %26 = vector.shape_cast %23 : vector<64x128xf32> to vector<1x64x128xf32>
    tpu.vector_store %arg4[%c0_23, %c0_24, %c0_25], %26 {strides = array<i32>} : memref<1x64x128xf32, #tpu.memory_space<vmem>>, vector<1x64x128xf32>,
    %cst_26 = arith.constant dense<0.000000e+00> : vector<128xf32>
    %27 = vector.multi_reduction <add>, %23, %cst_26 [0] : vector<64x128xf32> to vector<128xf32>
    %28 = vector.shape_cast %27 : vector<128xf32> to vector<1x128xf32>
    %c0_27 = arith.constant 0 : index
    %c0_28 = arith.constant 0 : index
    %c0_29 = arith.constant 0 : index
    %29 = vector.load %arg5[%c0_27, %c0_28, %c0_29] : memref<1x1x128xf32, #tpu.memory_space<vmem>>, vector<1x1x128xf32>
    %30 = vector.shape_cast %29 : vector<1x1x128xf32> to vector<1x128xf32>
    %31 = vector.shape_cast %28 : vector<1x128xf32> to vector<1x1x128xf32>
    tpu.vector_store %arg5[%c0_27, %c0_28, %c0_29], %31 {strides = array<i32>} : memref<1x1x128xf32, #tpu.memory_space<vmem>>, vector<1x1x128xf32>,
    %32 = arith.mulf %23, %23 : vector<64x128xf32>
    %cst_30 = arith.constant dense<0.000000e+00> : vector<128xf32>
    %33 = vector.multi_reduction <add>, %32, %cst_30 [0] : vector<64x128xf32> to vector<128xf32>
    %34 = vector.shape_cast %33 : vector<128xf32> to vector<1x128xf32>
    %c0_31 = arith.constant 0 : index
    %c0_32 = arith.constant 0 : index
    %c0_33 = arith.constant 0 : index
    %35 = vector.load %arg6[%c0_31, %c0_32, %c0_33] : memref<1x1x128xf32, #tpu.memory_space<vmem>>, vector<1x1x128xf32>
    %36 = vector.shape_cast %35 : vector<1x1x128xf32> to vector<1x128xf32>
    %37 = vector.shape_cast %34 : vector<1x128xf32> to vector<1x1x128xf32>
    tpu.vector_store %arg6[%c0_31, %c0_32, %c0_33], %37 {strides = array<i32>} : memref<1x1x128xf32, #tpu.memory_space<vmem>>, vector<1x1x128xf32>,
    return
  }
  func.func @transform_0(%arg0: i32) -> (i32, i32, i32, i32) {
    %c0_i32 = arith.constant 0 : i32
    %c0_i32_0 = arith.constant 0 : i32
    %c0_i32_1 = arith.constant 0 : i32
    %c0_i32_2 = arith.constant 0 : i32
    return %arg0, %c0_i32, %c0_i32_0, %c0_i32_1 : i32, i32, i32, i32
  }
  func.func @transform_1(%arg0: i32) -> (i32, i32, i32) {
    %c0_i32 = arith.constant 0 : i32
    %c0_i32_0 = arith.constant 0 : i32
    %c0_i32_1 = arith.constant 0 : i32
    %c0_i32_2 = arith.constant 0 : i32
    return %c0_i32, %c0_i32_0, %c0_i32_1 : i32, i32, i32
  }
  func.func @transform_2(%arg0: i32) -> (i32, i32) {
    %c0_i32 = arith.constant 0 : i32
    %c0_i32_0 = arith.constant 0 : i32
    %c0_i32_1 = arith.constant 0 : i32
    return %c0_i32, %c0_i32_0 : i32, i32
  }
  func.func @transform_3(%arg0: i32) -> (i32, i32, i32) {
    %c0_i32 = arith.constant 0 : i32
    %c0_i32_0 = arith.constant 0 : i32
    %c0_i32_1 = arith.constant 0 : i32
    return %arg0, %c0_i32, %c0_i32_0 : i32, i32, i32
  }
  func.func @transform_4(%arg0: i32) -> (i32, i32, i32) {
    %c0_i32 = arith.constant 0 : i32
    %c0_i32_0 = arith.constant 0 : i32
    %c0_i32_1 = arith.constant 0 : i32
    return %arg0, %c0_i32, %c0_i32_0 : i32, i32, i32
  }
  func.func @transform_5(%arg0: i32) -> (i32, i32, i32) {
    %c0_i32 = arith.constant 0 : i32
    %c0_i32_0 = arith.constant 0 : i32
    %c0_i32_1 = arith.constant 0 : i32
    return %arg0, %c0_i32, %c0_i32_0 : i32, i32, i32
  }
}

module attributes {stable_mosaic.version = 11 : i64} {
  func.func @_bn_apply_kernel(%arg0: i32, %arg1: memref<1x64x128xf32, #tpu.memory_space<vmem>>, %arg2: memref<1x128xf32, #tpu.memory_space<vmem>>, %arg3: memref<1x128xf32, #tpu.memory_space<vmem>>, %arg4: memref<1x64x128xbf16, #tpu.memory_space<vmem>>) attributes {dimension_semantics = [#tpu.dimension_semantics<parallel>], iteration_bounds = array<i64: 2>, scalar_prefetch = 0 : i64, scratch_operands = 0 : i64, tpu.core_type = #tpu.core_type<tc>, window_params = [{transform_indices = @transform_0, window_bounds = array<i64: 1, 64, 128>}, {pipeline_mode = #tpu.pipeline_mode<synchronous>, transform_indices = @transform_1, window_bounds = array<i64: 1, 128>}, {pipeline_mode = #tpu.pipeline_mode<synchronous>, transform_indices = @transform_2, window_bounds = array<i64: 1, 128>}, {transform_indices = @transform_3, window_bounds = array<i64: 1, 64, 128>}]} {
    %c0 = arith.constant 0 : index
    %c0_0 = arith.constant 0 : index
    %c0_1 = arith.constant 0 : index
    %0 = vector.load %arg1[%c0, %c0_0, %c0_1] : memref<1x64x128xf32, #tpu.memory_space<vmem>>, vector<1x64x128xf32>
    %1 = vector.shape_cast %0 : vector<1x64x128xf32> to vector<64x128xf32>
    %c0_2 = arith.constant 0 : index
    %c0_3 = arith.constant 0 : index
    %2 = vector.load %arg2[%c0_2, %c0_3] : memref<1x128xf32, #tpu.memory_space<vmem>>, vector<1x128xf32>
    %3 = vector.broadcast %2 : vector<1x128xf32> to vector<64x128xf32>
    %4 = arith.mulf %1, %3 : vector<64x128xf32>
    %c0_4 = arith.constant 0 : index
    %c0_5 = arith.constant 0 : index
    %5 = vector.load %arg3[%c0_4, %c0_5] : memref<1x128xf32, #tpu.memory_space<vmem>>, vector<1x128xf32>
    %6 = vector.broadcast %5 : vector<1x128xf32> to vector<64x128xf32>
    %7 = arith.addf %4, %6 : vector<64x128xf32>
    %8 = arith.truncf %7 : vector<64x128xf32> to vector<64x128xbf16>
    %c0_6 = arith.constant 0 : index
    %c0_7 = arith.constant 0 : index
    %c0_8 = arith.constant 0 : index
    %9 = vector.load %arg4[%c0_6, %c0_7, %c0_8] : memref<1x64x128xbf16, #tpu.memory_space<vmem>>, vector<1x64x128xbf16>
    %10 = vector.shape_cast %9 : vector<1x64x128xbf16> to vector<64x128xbf16>
    %11 = vector.shape_cast %8 : vector<64x128xbf16> to vector<1x64x128xbf16>
    tpu.vector_store %arg4[%c0_6, %c0_7, %c0_8], %11 {strides = array<i32>} : memref<1x64x128xbf16, #tpu.memory_space<vmem>>, vector<1x64x128xbf16>,
    return
  }
  func.func @transform_0(%arg0: i32) -> (i32, i32, i32) {
    %c0_i32 = arith.constant 0 : i32
    %c0_i32_0 = arith.constant 0 : i32
    %c0_i32_1 = arith.constant 0 : i32
    return %arg0, %c0_i32, %c0_i32_0 : i32, i32, i32
  }
  func.func @transform_1(%arg0: i32) -> (i32, i32) {
    %c0_i32 = arith.constant 0 : i32
    %c0_i32_0 = arith.constant 0 : i32
    %c0_i32_1 = arith.constant 0 : i32
    return %c0_i32, %c0_i32_0 : i32, i32
  }
  func.func @transform_2(%arg0: i32) -> (i32, i32) {
    %c0_i32 = arith.constant 0 : i32
    %c0_i32_0 = arith.constant 0 : i32
    %c0_i32_1 = arith.constant 0 : i32
    return %c0_i32, %c0_i32_0 : i32, i32
  }
  func.func @transform_3(%arg0: i32) -> (i32, i32, i32) {
    %c0_i32 = arith.constant 0 : i32
    %c0_i32_0 = arith.constant 0 : i32
    %c0_i32_1 = arith.constant 0 : i32
    return %arg0, %c0_i32, %c0_i32_0 : i32, i32, i32
  }
}

module attributes {stable_mosaic.version = 11 : i64} {
  func.func @_conv_relu_stats_kernel(%arg0: i32, %arg1: memref<1x2x20x24xbf16, #tpu.memory_space<vmem>>, %arg2: memref<3x24x128xbf16, #tpu.memory_space<vmem>>, %arg3: memref<1x128xf32, #tpu.memory_space<vmem>>, %arg4: memref<1x16x128xf32, #tpu.memory_space<vmem>>, %arg5: memref<1x1x128xf32, #tpu.memory_space<vmem>>, %arg6: memref<1x1x128xf32, #tpu.memory_space<vmem>>) attributes {dimension_semantics = [#tpu.dimension_semantics<parallel>], iteration_bounds = array<i64: 2>, scalar_prefetch = 0 : i64, scratch_operands = 0 : i64, tpu.core_type = #tpu.core_type<tc>, window_params = [{transform_indices = @transform_0, window_bounds = array<i64: 1, 2, 20, 24>}, {pipeline_mode = #tpu.pipeline_mode<synchronous>, transform_indices = @transform_1, window_bounds = array<i64: 3, 24, 128>}, {pipeline_mode = #tpu.pipeline_mode<synchronous>, transform_indices = @transform_2, window_bounds = array<i64: 1, 128>}, {transform_indices = @transform_3, window_bounds = array<i64: 1, 16, 128>}, {transform_indices = @transform_4, window_bounds = array<i64: 1, 1, 128>}, {transform_indices = @transform_5, window_bounds = array<i64: 1, 1, 128>}]} {
    %cst = arith.constant 0.000000e+00 : f32
    %0 = vector.broadcast %cst : f32 to vector<16x128xf32>
    %c0 = arith.constant 0 : index
    %c0_0 = arith.constant 0 : index
    %c0_1 = arith.constant 0 : index
    %c0_2 = arith.constant 0 : index
    %1 = vector.load %arg1[%c0, %c0_0, %c0_1, %c0_2] : memref<1x2x20x24xbf16, #tpu.memory_space<vmem>>, vector<1x1x16x24xbf16>
    %2 = vector.shape_cast %1 : vector<1x1x16x24xbf16> to vector<16x24xbf16>
    %c0_3 = arith.constant 0 : index
    %c0_4 = arith.constant 0 : index
    %c0_5 = arith.constant 0 : index
    %3 = vector.load %arg2[%c0_3, %c0_4, %c0_5] : memref<3x24x128xbf16, #tpu.memory_space<vmem>>, vector<1x24x128xbf16>
    %4 = vector.shape_cast %3 : vector<1x24x128xbf16> to vector<24x128xbf16>
    %cst_6 = arith.constant dense<0.000000e+00> : vector<16x128xf32>
    %5 = tpu.matmul %2, %4, %cst_6 {dimension_numbers = #tpu.dot_dimension_numbers<[1], [0], [0], [1], [0, 0, 1, 1], [], []>} : vector<16x24xbf16>, vector<24x128xbf16>, vector<16x128xf32> -> vector<16x128xf32>
    %6 = arith.addf %0, %5 : vector<16x128xf32>
    %c0_7 = arith.constant 0 : index
    %c1 = arith.constant 1 : index
    %c0_8 = arith.constant 0 : index
    %c0_9 = arith.constant 0 : index
    %7 = vector.load %arg1[%c0_7, %c1, %c0_8, %c0_9] : memref<1x2x20x24xbf16, #tpu.memory_space<vmem>>, vector<1x1x16x24xbf16>
    %8 = vector.shape_cast %7 : vector<1x1x16x24xbf16> to vector<16x24xbf16>
    %c1_10 = arith.constant 1 : index
    %c0_11 = arith.constant 0 : index
    %c0_12 = arith.constant 0 : index
    %9 = vector.load %arg2[%c1_10, %c0_11, %c0_12] : memref<3x24x128xbf16, #tpu.memory_space<vmem>>, vector<1x24x128xbf16>
    %10 = vector.shape_cast %9 : vector<1x24x128xbf16> to vector<24x128xbf16>
    %cst_13 = arith.constant dense<0.000000e+00> : vector<16x128xf32>
    %11 = tpu.matmul %8, %10, %cst_13 {dimension_numbers = #tpu.dot_dimension_numbers<[1], [0], [0], [1], [0, 0, 1, 1], [], []>} : vector<16x24xbf16>, vector<24x128xbf16>, vector<16x128xf32> -> vector<16x128xf32>
    %12 = arith.addf %6, %11 : vector<16x128xf32>
    %c0_14 = arith.constant 0 : index
    %c0_15 = arith.constant 0 : index
    %c4 = arith.constant 4 : index
    %c0_16 = arith.constant 0 : index
    %13 = vector.load %arg1[%c0_14, %c0_15, %c4, %c0_16] : memref<1x2x20x24xbf16, #tpu.memory_space<vmem>>, vector<1x1x16x24xbf16>
    %14 = vector.shape_cast %13 : vector<1x1x16x24xbf16> to vector<16x24xbf16>
    %c2 = arith.constant 2 : index
    %c0_17 = arith.constant 0 : index
    %c0_18 = arith.constant 0 : index
    %15 = vector.load %arg2[%c2, %c0_17, %c0_18] : memref<3x24x128xbf16, #tpu.memory_space<vmem>>, vector<1x24x128xbf16>
    %16 = vector.shape_cast %15 : vector<1x24x128xbf16> to vector<24x128xbf16>
    %cst_19 = arith.constant dense<0.000000e+00> : vector<16x128xf32>
    %17 = tpu.matmul %14, %16, %cst_19 {dimension_numbers = #tpu.dot_dimension_numbers<[1], [0], [0], [1], [0, 0, 1, 1], [], []>} : vector<16x24xbf16>, vector<24x128xbf16>, vector<16x128xf32> -> vector<16x128xf32>
    %18 = arith.addf %12, %17 : vector<16x128xf32>
    %c0_20 = arith.constant 0 : index
    %c0_21 = arith.constant 0 : index
    %19 = vector.load %arg3[%c0_20, %c0_21] : memref<1x128xf32, #tpu.memory_space<vmem>>, vector<1x128xf32>
    %20 = vector.broadcast %19 : vector<1x128xf32> to vector<16x128xf32>
    %21 = arith.addf %18, %20 : vector<16x128xf32>
    %cst_22 = arith.constant 0.000000e+00 : f32
    %22 = vector.broadcast %cst_22 : f32 to vector<16x128xf32>
    %23 = arith.maximumf %21, %22 : vector<16x128xf32>
    %c0_23 = arith.constant 0 : index
    %c0_24 = arith.constant 0 : index
    %c0_25 = arith.constant 0 : index
    %24 = vector.load %arg4[%c0_23, %c0_24, %c0_25] : memref<1x16x128xf32, #tpu.memory_space<vmem>>, vector<1x16x128xf32>
    %25 = vector.shape_cast %24 : vector<1x16x128xf32> to vector<16x128xf32>
    %26 = vector.shape_cast %23 : vector<16x128xf32> to vector<1x16x128xf32>
    tpu.vector_store %arg4[%c0_23, %c0_24, %c0_25], %26 {strides = array<i32>} : memref<1x16x128xf32, #tpu.memory_space<vmem>>, vector<1x16x128xf32>,
    %cst_26 = arith.constant dense<0.000000e+00> : vector<128xf32>
    %27 = vector.multi_reduction <add>, %23, %cst_26 [0] : vector<16x128xf32> to vector<128xf32>
    %28 = vector.shape_cast %27 : vector<128xf32> to vector<1x128xf32>
    %c0_27 = arith.constant 0 : index
    %c0_28 = arith.constant 0 : index
    %c0_29 = arith.constant 0 : index
    %29 = vector.load %arg5[%c0_27, %c0_28, %c0_29] : memref<1x1x128xf32, #tpu.memory_space<vmem>>, vector<1x1x128xf32>
    %30 = vector.shape_cast %29 : vector<1x1x128xf32> to vector<1x128xf32>
    %31 = vector.shape_cast %28 : vector<1x128xf32> to vector<1x1x128xf32>
    tpu.vector_store %arg5[%c0_27, %c0_28, %c0_29], %31 {strides = array<i32>} : memref<1x1x128xf32, #tpu.memory_space<vmem>>, vector<1x1x128xf32>,
    %32 = arith.mulf %23, %23 : vector<16x128xf32>
    %cst_30 = arith.constant dense<0.000000e+00> : vector<128xf32>
    %33 = vector.multi_reduction <add>, %32, %cst_30 [0] : vector<16x128xf32> to vector<128xf32>
    %34 = vector.shape_cast %33 : vector<128xf32> to vector<1x128xf32>
    %c0_31 = arith.constant 0 : index
    %c0_32 = arith.constant 0 : index
    %c0_33 = arith.constant 0 : index
    %35 = vector.load %arg6[%c0_31, %c0_32, %c0_33] : memref<1x1x128xf32, #tpu.memory_space<vmem>>, vector<1x1x128xf32>
    %36 = vector.shape_cast %35 : vector<1x1x128xf32> to vector<1x128xf32>
    %37 = vector.shape_cast %34 : vector<1x128xf32> to vector<1x1x128xf32>
    tpu.vector_store %arg6[%c0_31, %c0_32, %c0_33], %37 {strides = array<i32>} : memref<1x1x128xf32, #tpu.memory_space<vmem>>, vector<1x1x128xf32>,
    return
  }
  func.func @transform_0(%arg0: i32) -> (i32, i32, i32, i32) {
    %c0_i32 = arith.constant 0 : i32
    %c0_i32_0 = arith.constant 0 : i32
    %c0_i32_1 = arith.constant 0 : i32
    %c0_i32_2 = arith.constant 0 : i32
    return %arg0, %c0_i32, %c0_i32_0, %c0_i32_1 : i32, i32, i32, i32
  }
  func.func @transform_1(%arg0: i32) -> (i32, i32, i32) {
    %c0_i32 = arith.constant 0 : i32
    %c0_i32_0 = arith.constant 0 : i32
    %c0_i32_1 = arith.constant 0 : i32
    %c0_i32_2 = arith.constant 0 : i32
    return %c0_i32, %c0_i32_0, %c0_i32_1 : i32, i32, i32
  }
  func.func @transform_2(%arg0: i32) -> (i32, i32) {
    %c0_i32 = arith.constant 0 : i32
    %c0_i32_0 = arith.constant 0 : i32
    %c0_i32_1 = arith.constant 0 : i32
    return %c0_i32, %c0_i32_0 : i32, i32
  }
  func.func @transform_3(%arg0: i32) -> (i32, i32, i32) {
    %c0_i32 = arith.constant 0 : i32
    %c0_i32_0 = arith.constant 0 : i32
    %c0_i32_1 = arith.constant 0 : i32
    return %arg0, %c0_i32, %c0_i32_0 : i32, i32, i32
  }
  func.func @transform_4(%arg0: i32) -> (i32, i32, i32) {
    %c0_i32 = arith.constant 0 : i32
    %c0_i32_0 = arith.constant 0 : i32
    %c0_i32_1 = arith.constant 0 : i32
    return %arg0, %c0_i32, %c0_i32_0 : i32, i32, i32
  }
  func.func @transform_5(%arg0: i32) -> (i32, i32, i32) {
    %c0_i32 = arith.constant 0 : i32
    %c0_i32_0 = arith.constant 0 : i32
    %c0_i32_1 = arith.constant 0 : i32
    return %arg0, %c0_i32, %c0_i32_0 : i32, i32, i32
  }
}

module attributes {stable_mosaic.version = 11 : i64} {
  func.func @_bn_apply_kernel(%arg0: i32, %arg1: memref<1x16x128xf32, #tpu.memory_space<vmem>>, %arg2: memref<1x128xf32, #tpu.memory_space<vmem>>, %arg3: memref<1x128xf32, #tpu.memory_space<vmem>>, %arg4: memref<1x16x128xbf16, #tpu.memory_space<vmem>>) attributes {dimension_semantics = [#tpu.dimension_semantics<parallel>], iteration_bounds = array<i64: 2>, scalar_prefetch = 0 : i64, scratch_operands = 0 : i64, tpu.core_type = #tpu.core_type<tc>, window_params = [{transform_indices = @transform_0, window_bounds = array<i64: 1, 16, 128>}, {pipeline_mode = #tpu.pipeline_mode<synchronous>, transform_indices = @transform_1, window_bounds = array<i64: 1, 128>}, {pipeline_mode = #tpu.pipeline_mode<synchronous>, transform_indices = @transform_2, window_bounds = array<i64: 1, 128>}, {transform_indices = @transform_3, window_bounds = array<i64: 1, 16, 128>}]} {
    %c0 = arith.constant 0 : index
    %c0_0 = arith.constant 0 : index
    %c0_1 = arith.constant 0 : index
    %0 = vector.load %arg1[%c0, %c0_0, %c0_1] : memref<1x16x128xf32, #tpu.memory_space<vmem>>, vector<1x16x128xf32>
    %1 = vector.shape_cast %0 : vector<1x16x128xf32> to vector<16x128xf32>
    %c0_2 = arith.constant 0 : index
    %c0_3 = arith.constant 0 : index
    %2 = vector.load %arg2[%c0_2, %c0_3] : memref<1x128xf32, #tpu.memory_space<vmem>>, vector<1x128xf32>
    %3 = vector.broadcast %2 : vector<1x128xf32> to vector<16x128xf32>
    %4 = arith.mulf %1, %3 : vector<16x128xf32>
    %c0_4 = arith.constant 0 : index
    %c0_5 = arith.constant 0 : index
    %5 = vector.load %arg3[%c0_4, %c0_5] : memref<1x128xf32, #tpu.memory_space<vmem>>, vector<1x128xf32>
    %6 = vector.broadcast %5 : vector<1x128xf32> to vector<16x128xf32>
    %7 = arith.addf %4, %6 : vector<16x128xf32>
    %8 = arith.truncf %7 : vector<16x128xf32> to vector<16x128xbf16>
    %c0_6 = arith.constant 0 : index
    %c0_7 = arith.constant 0 : index
    %c0_8 = arith.constant 0 : index
    %9 = vector.load %arg4[%c0_6, %c0_7, %c0_8] : memref<1x16x128xbf16, #tpu.memory_space<vmem>>, vector<1x16x128xbf16>
    %10 = vector.shape_cast %9 : vector<1x16x128xbf16> to vector<16x128xbf16>
    %11 = vector.shape_cast %8 : vector<16x128xbf16> to vector<1x16x128xbf16>
    tpu.vector_store %arg4[%c0_6, %c0_7, %c0_8], %11 {strides = array<i32>} : memref<1x16x128xbf16, #tpu.memory_space<vmem>>, vector<1x16x128xbf16>,
    return
  }
  func.func @transform_0(%arg0: i32) -> (i32, i32, i32) {
    %c0_i32 = arith.constant 0 : i32
    %c0_i32_0 = arith.constant 0 : i32
    %c0_i32_1 = arith.constant 0 : i32
    return %arg0, %c0_i32, %c0_i32_0 : i32, i32, i32
  }
  func.func @transform_1(%arg0: i32) -> (i32, i32) {
    %c0_i32 = arith.constant 0 : i32
    %c0_i32_0 = arith.constant 0 : i32
    %c0_i32_1 = arith.constant 0 : i32
    return %c0_i32, %c0_i32_0 : i32, i32
  }
  func.func @transform_2(%arg0: i32) -> (i32, i32) {
    %c0_i32 = arith.constant 0 : i32
    %c0_i32_0 = arith.constant 0 : i32
    %c0_i32_1 = arith.constant 0 : i32
    return %c0_i32, %c0_i32_0 : i32, i32
  }
  func.func @transform_3(%arg0: i32) -> (i32, i32, i32) {
    %c0_i32 = arith.constant 0 : i32
    %c0_i32_0 = arith.constant 0 : i32
    %c0_i32_1 = arith.constant 0 : i32
    return %arg0, %c0_i32, %c0_i32_0 : i32, i32, i32
  }
}

module attributes {stable_mosaic.version = 11 : i64} {
  func.func @_linear_kernel(%arg0: i32, %arg1: memref<2x2048xbf16, #tpu.memory_space<vmem>>, %arg2: memref<2048x128xbf16, #tpu.memory_space<vmem>>, %arg3: memref<1x128xf32, #tpu.memory_space<vmem>>, %arg4: memref<2x128xf32, #tpu.memory_space<vmem>>, %arg5: memref<2x128xf32, #tpu.memory_space<vmem>>) attributes {dimension_semantics = [#tpu.dimension_semantics<arbitrary>], iteration_bounds = array<i64: 1>, scalar_prefetch = 0 : i64, scratch_operands = 1 : i64, tpu.core_type = #tpu.core_type<tc>, window_params = [{transform_indices = @transform_0, window_bounds = array<i64: 2, 2048>}, {transform_indices = @transform_1, window_bounds = array<i64: 2048, 128>}, {pipeline_mode = #tpu.pipeline_mode<synchronous>, transform_indices = @transform_2, window_bounds = array<i64: 1, 128>}, {pipeline_mode = #tpu.pipeline_mode<synchronous>, transform_indices = @transform_3, window_bounds = array<i64: 2, 128>}]} {
    %c0_i32 = arith.constant 0 : i32
    %0 = arith.cmpi eq, %arg0, %c0_i32 : i32
    %1 = arith.extui %0 : i1 to i32
    %c0_i32_0 = arith.constant 0 : i32
    %2 = arith.cmpi ne, %1, %c0_i32_0 : i32
    scf.if %2 {
      %cst_10 = arith.constant 0.000000e+00 : f32
      %12 = vector.broadcast %cst_10 : f32 to vector<2x128xf32>
      %c0_11 = arith.constant 0 : index
      %c0_12 = arith.constant 0 : index
      %13 = vector.load %arg5[%c0_11, %c0_12] : memref<2x128xf32, #tpu.memory_space<vmem>>, vector<2x128xf32>
      tpu.vector_store %arg5[%c0_11, %c0_12], %12 {strides = array<i32>} : memref<2x128xf32, #tpu.memory_space<vmem>>, vector<2x128xf32>,
    } else {
    }
    %c0 = arith.constant 0 : index
    %c0_1 = arith.constant 0 : index
    %3 = vector.load %arg5[%c0, %c0_1] : memref<2x128xf32, #tpu.memory_space<vmem>>, vector<2x128xf32>
    %c0_2 = arith.constant 0 : index
    %c0_3 = arith.constant 0 : index
    %4 = vector.load %arg1[%c0_2, %c0_3] : memref<2x2048xbf16, #tpu.memory_space<vmem>>, vector<2x2048xbf16>
    %c0_4 = arith.constant 0 : index
    %c0_5 = arith.constant 0 : index
    %5 = vector.load %arg2[%c0_4, %c0_5] : memref<2048x128xbf16, #tpu.memory_space<vmem>>, vector<2048x128xbf16>
    %cst = arith.constant dense<0.000000e+00> : vector<2x128xf32>
    %6 = tpu.matmul %4, %5, %cst {dimension_numbers = #tpu.dot_dimension_numbers<[1], [0], [0], [1], [0, 0, 1, 1], [], []>} : vector<2x2048xbf16>, vector<2048x128xbf16>, vector<2x128xf32> -> vector<2x128xf32>
    %7 = arith.addf %3, %6 : vector<2x128xf32>
    %c0_6 = arith.constant 0 : index
    %c0_7 = arith.constant 0 : index
    %8 = vector.load %arg5[%c0_6, %c0_7] : memref<2x128xf32, #tpu.memory_space<vmem>>, vector<2x128xf32>
    tpu.vector_store %arg5[%c0_6, %c0_7], %7 {strides = array<i32>} : memref<2x128xf32, #tpu.memory_space<vmem>>, vector<2x128xf32>,
    %c0_i32_8 = arith.constant 0 : i32
    %9 = arith.cmpi eq, %arg0, %c0_i32_8 : i32
    %10 = arith.extui %9 : i1 to i32
    %c0_i32_9 = arith.constant 0 : i32
    %11 = arith.cmpi ne, %10, %c0_i32_9 : i32
    scf.if %11 {
      %c0_10 = arith.constant 0 : index
      %c0_11 = arith.constant 0 : index
      %12 = vector.load %arg5[%c0_10, %c0_11] : memref<2x128xf32, #tpu.memory_space<vmem>>, vector<2x128xf32>
      %c0_12 = arith.constant 0 : index
      %c0_13 = arith.constant 0 : index
      %13 = vector.load %arg3[%c0_12, %c0_13] : memref<1x128xf32, #tpu.memory_space<vmem>>, vector<1x128xf32>
      %14 = vector.broadcast %13 : vector<1x128xf32> to vector<2x128xf32>
      %15 = arith.addf %12, %14 : vector<2x128xf32>
      %c0_14 = arith.constant 0 : index
      %c0_15 = arith.constant 0 : index
      %16 = vector.load %arg4[%c0_14, %c0_15] : memref<2x128xf32, #tpu.memory_space<vmem>>, vector<2x128xf32>
      tpu.vector_store %arg4[%c0_14, %c0_15], %15 {strides = array<i32>} : memref<2x128xf32, #tpu.memory_space<vmem>>, vector<2x128xf32>,
    } else {
    }
    return
  }
  func.func @transform_0(%arg0: i32) -> (i32, i32) {
    %c0_i32 = arith.constant 0 : i32
    %c0_i32_0 = arith.constant 0 : i32
    return %c0_i32, %arg0 : i32, i32
  }
  func.func @transform_1(%arg0: i32) -> (i32, i32) {
    %c0_i32 = arith.constant 0 : i32
    %c0_i32_0 = arith.constant 0 : i32
    return %arg0, %c0_i32 : i32, i32
  }
  func.func @transform_2(%arg0: i32) -> (i32, i32) {
    %c0_i32 = arith.constant 0 : i32
    %c0_i32_0 = arith.constant 0 : i32
    %c0_i32_1 = arith.constant 0 : i32
    return %c0_i32, %c0_i32_0 : i32, i32
  }
  func.func @transform_3(%arg0: i32) -> (i32, i32) {
    %c0_i32 = arith.constant 0 : i32
    %c0_i32_0 = arith.constant 0 : i32
    %c0_i32_1 = arith.constant 0 : i32
    return %c0_i32, %c0_i32_0 : i32, i32
  }
}

</mosaic_0001>

<bundles_post_ra>
// kernel: forward.6
= control target key start
LH: loop header
LB: loop body
LE: loop exit
PB: predicated region body
PF: predicated region fallthrough
CT: control target
= control target key end

     0   :  { %s394_s12 = smov 0   ;;  %s417_s0 = inlined_call_operand.vmem [shape: f32[2,64,128], index: 0, kind: input, shape index: {}]   ;;  %s418_s1 = inlined_call_operand.vmem [shape: f32[1,128], index: 1, kind: input, shape index: {}]   ;;  %s419_s2 = inlined_call_operand.vmem [shape: f32[1,128], index: 2, kind: input, shape index: {}]   ;;  %s420_s3 = inlined_call_operand.vmem [shape: bf16[2,64,128], index: 3, kind: output, shape index: {}]  }
   0x1 LB: > { %s304_s13 = sadd.s32 4294967295, %s372_s12   ;;  %p308_p0 = scmp.ge.s32.totalorder %s372_s12, 1  ;;  %s372_s12 = sphi %s394_s12, %s13_s12  }
   0x2   : > { %p137_p1 = scmp.lt.s32.totalorder %s372_s12, 3 }
   0x4   : > { %p138_p2 = pnand %p308_p0, %p137_p1 }
   0x5   : > { %p161_p3 = scmp.lt.s32.totalorder (!%p138_p2), %s304_s13, 1  ;;  %v313_v0 = vld [vmem:[%s418_s1] ss:$0 sm:$0xff] (!%p138_p2) }
   0x6   : > { %141 = sbr.rel (%p138_p2) target bundleno = 27 (0x1b), region = 32  ;;  %v314_v1 = vld [vmem:[%s419_s2] ss:$0 sm:$0xff] (!%p138_p2) }
   0xd   : > { %s422_s13 = smov (!%p161_p3, %s304_s13), 1 }
   0xe   : > { %s325_s14 = sshll.u32 %s422_s13, 6  ;;  %s326_s22 = sshll.u32 %s422_s13, 5 }
   0xf   : > { %s165_s19 = scalar_lea.vmem %s417_s0, %s325_s14  ;;  %s170_s25 = scalar_lea.vmem %s420_s3, %s326_s22 }
  0x10   : > { %v171_v2 = vld [vmem:[%s165_s19] sm:$0xff]  ;;  %v172_v3 = vld [vmem:[%s165_s19 + $0x8] sm:$0xff]  ;;  %v173_v4 = vld [vmem:[%s165_s19 + $0x10] sm:$0xff] }
  0x11   : > { %v186_v5 = vmul.f32 %v313_v0, %v171_v2  ;;  %v187_v6 = vmul.f32 %v313_v0, %v172_v3  ;;  %v174_v7 = vld [vmem:[%s165_s19 + $0x18] sm:$0xff]  ;;  %v188_v8 = vmul.f32 %v313_v0, %v173_v4  ;;  %v175_v9 = vld [vmem:[%s165_s19 + $0x20] sm:$0xff]  ;;  %v176_v10 = vld [vmem:[%s165_s19 + $0x28] sm:$0xff] }
  0x12   : > { %v189_v11 = vmul.f32 %v313_v0, %v174_v7  ;;  %v190_v12 = vmul.f32 %v313_v0, %v175_v9  ;;  %v191_v13 = vmul.f32 %v313_v0, %v176_v10  ;;  %v177_v14 = vld [vmem:[%s165_s19 + $0x30] sm:$0xff]  ;;  %v178_v15 = vld [vmem:[%s165_s19 + $0x38] sm:$0xff] }
  0x13   : > { %v201_v16 = vadd.f32 %v314_v1, %v186_v5  ;;  %v202_v17 = vadd.f32 %v314_v1, %v187_v6  ;;  %v203_v18 = vadd.f32 %v314_v1, %v188_v8  ;;  %v192_v19 = vmul.f32 %v313_v0, %v177_v14 }
  0x14   : > { %v204_v20 = vadd.f32 %v314_v1, %v189_v11  ;;  %v205_v21 = vadd.f32 %v314_v1, %v190_v12  ;;  %v206_v22 = vadd.f32 %v314_v1, %v191_v13  ;;  %v193_v23 = vmul.f32 %v313_v0, %v178_v15 }
  0x15   : > { %v338_v24 = vpack.c.bf16 %v202_v17, %v201_v16  ;;  %v207_v25 = vadd.f32 %v314_v1, %v192_v19 }
  0x16   : > { %v343_v26 = vpack.c.bf16 %v204_v20, %v203_v18  ;;  %v348_v27 = vpack.c.bf16 %v206_v22, %v205_v21  ;;  %v208_v28 = vadd.f32 %v314_v1, %v193_v23 }
  0x17   : > { %339 = vst [vmem:[%s170_s25] sm:$0xff] %v338_v24  }
  0x18   : > { %355 = vst [vmem:[%s170_s25 + $0x8] sm:$0xff] %v343_v26   ;;  %356 = vst [vmem:[%s170_s25 + $0x10] sm:$0xff] %v348_v27   ;;  %v353_v29 = vpack.c.bf16 %v208_v28, %v207_v25 }
  0x1a   : > { %357 = vst [vmem:[%s170_s25 + $0x18] sm:$0xff] %v353_v29  }
  0x1b PF: > { %s13_s12 = sadd.s32 1, %s372_s12  }
  0x1c   : > { %p10_p4 = scmp.ge.s32.totalorder %s13_s12, 4  }
  0x1e   :  { %12 = sbr.rel (!%p10_p4) target bundleno = 1 (0x1), region = 62 }

// kernel: forward.5
= control target key start
LH: loop header
LB: loop body
LE: loop exit
PB: predicated region body
PF: predicated region fallthrough
CT: control target
= control target key end

     0   :  { %s953_s18 = smov 0   ;;  %s1023_s0 = inlined_call_operand.vmem [shape: bf16[2,2,72,12], index: 0, kind: input, shape index: {}]   ;;  %s1024_s1 = inlined_call_operand.vmem [shape: bf16[3,12,128], index: 1, kind: input, shape index: {}]   ;;  %s1025_s2 = inlined_call_operand.vmem [shape: f32[1,128], index: 2, kind: input, shape index: {}]   ;;  %s1026_s3 = inlined_call_operand.vmem [shape: f32[2,64,128], index: 3, kind: output, shape index: {0}]   ;;  %s1027_s4 = inlined_call_operand.vmem [shape: f32[2,1,128], index: 4, kind: output, shape index: {1}]   ;;  %s1028_s5 = inlined_call_operand.vmem [shape: f32[2,1,128], index: 5, kind: output, shape index: {2}]  }
   0x1 LB: > { %s773_s19 = sadd.s32 4294967295, %s921_s18   ;;  %p777_p0 = scmp.ge.s32.totalorder %s921_s18, 1  ;;  %s921_s18 = sphi %s953_s18, %s16_s18  }
   0x2   : > { %p192_p1 = scmp.lt.s32.totalorder %s921_s18, 3 }
   0x4   : > { %p193_p2 = pnand %p777_p0, %p192_p1 }
   0x5   : > { %v900_v0 = vld [vmem:[%s1024_s1 + $0x8] sm:$0x3f] (!%p193_p2)   ;;  %vm303_vm0 = vcmask (!%p193_p2), 1045504   ;;  %p226_p3 = scmp.lt.s32.totalorder (!%p193_p2), %s773_s19, 1  ;;  %v901_v1 = vld [vmem:[%s1024_s1] sm:$0x3f] (!%p193_p2)  }
   0x6   : > { %196 = sbr.rel (%p193_p2) target bundleno = 282 (0x11a), region = 32  ;;  %887 = vmatprep.subr.msk.bf16.mxu1 (!%p193_p2), %vm303_vm0, %v900_v0  ;;  %v305_v2 = vsel (!%p193_p2), %vm303_vm0, %v900_v0, 0  ;;  %v904_v3 = vld [vmem:[%s1024_s1 + $0x10] sm:$0x3f] (!%p193_p2)   ;;  %888 = vmatprep.subr.msk.bf16.mxu0 (!%p193_p2), %vm303_vm0, %v901_v1  ;;  %v410_v4 = vsel (!%p193_p2), %vm303_vm0, %v901_v1, 0  ;;  %vm290_vm1 = vcmask (!%p193_p2), 97280  }
   0x7   : > { %840 = vmatpush3.bf16.msra.mxu1 (!%p193_p2), %v305_v2  ;;  %850 = vmatpush3.bf16.msra.mxu0 (!%p193_p2), %v410_v4  ;;  %v526_v9 = vsel (!%p193_p2), %vm303_vm0, %v904_v3, 0  ;;  %v820_v23 = vld [vmem:[%s1025_s2] ss:$0 sm:$0xff] (!%p193_p2) }
   0x8   : > { %889 = vmatprep.subr.msk.bf16.mxu1 (!%p193_p2), %vm303_vm0, %v901_v1  ;;  %890 = vmatprep.subr.msk.bf16.mxu0 (!%p193_p2), %vm303_vm0, %v904_v3 }
   0xd   : > { %s1030_s19 = smov (!%p226_p3, %s773_s19), 1 }
   0xe   : > { %s891_s26 = smul.u32 72, %s1030_s19  ;;  %s823_s7 = sshll.u32 %s1030_s19, 6 }
   0xf   : > { %s1002_s10 = scalar_lea.vmem %s1026_s3, %s823_s7  ;;  %s238_s13 = scalar_lea.vmem %s1027_s4, %s1030_s19 }
  0x10   : > { %s230_s29 = scalar_lea.vmem %s1023_s0, %s891_s26  ;;  %s241_s16 = scalar_lea.vmem %s1028_s5, %s1030_s19 }
  0x11   : > { %v902_v5 = vld [vmem:[%s230_s29 + $0x24] sm:$0xff]   ;;  %v905_v7 = vld [vmem:[%s230_s29 + $0x2c] sm:$0xff]   ;;  %v907_v10 = vld [vmem:[%s230_s29 + $0x34] sm:$0xff]  }
  0x12   : > { %v903_v6 = vld [vmem:[%s230_s29] sm:$0xff]   ;;  %841 = vmatprep.mubr.msk.bf16.mxu1 %vm290_vm1, %v902_v5  ;;  %v906_v8 = vld [vmem:[%s230_s29 + $0x8] sm:$0xff]   ;;  %v911_v13 = vld [vmem:[%s230_s29 + $0x10] sm:$0xff]  }
  0x13   : > { %851 = vmatprep.mubr.msk.bf16.mxu0 %vm290_vm1, %v903_v6  ;;  %842 = vmatmul.mubr.msk.bf16.vlgmr.msra.gmra.mrb[0].mxu1 %vm290_vm1, %v905_v7  ;;  %v909_v11 = vld [vmem:[%s230_s29 + $0x4] sm:$0xff]   ;;  %v908_v12 = vld [vmem:[%s230_s29 + $0x3c] sm:$0xff]   ;;  %v910_v14 = vld [vmem:[%s230_s29 + $0xc] sm:$0xff]  }
  0x14   : > { %870 = vmatpush3.bf16.msra.mxu1 %v410_v4  ;;  %852 = vmatmul.mubr.msk.bf16.vlgmr.msra.gmra.mrb[0].mxu0 %vm290_vm1, %v906_v8  ;;  %v912_v15 = vld [vmem:[%s230_s29 + $0x14] sm:$0xff]   ;;  %v914_v17 = vld [vmem:[%s230_s29 + $0x1c] sm:$0xff]  }
  0x15   : > { %860 = vmatpush3.bf16.msra.mxu0 %v526_v9  ;;  %845 = vmatprep.mubr.msk.bf16.mxu1 %vm290_vm1, %v907_v10  ;;  %v913_v16 = vld [vmem:[%s230_s29 + $0x18] sm:$0xff]  }
  0x16   : > { %861 = vmatprep.mubr.msk.bf16.mxu0 %vm290_vm1, %v909_v11 }
  0x1b   : > { %846 = vmatmul.mubr.msk.bf16.gmra.mrb[4].mxu1 %vm290_vm1, %v908_v12 }
  0x1c   : > { %855 = vmatprep.mubr.msk.bf16.mxu1 %vm290_vm1, %v911_v13 }
  0x20   : > { %862 = vmatmul.mubr.msk.bf16.vlgmr.msra.gmra.mrb[0].mxu0 %vm290_vm1, %v910_v14 }
  0x21   : > { %865 = vmatprep.mubr.msk.bf16.mxu0 %vm290_vm1, %v912_v15 }
  0x27   : > { %856 = vmatmul.mubr.msk.bf16.vlgmr.msra.gmra.mrb[4].mxu1 %vm290_vm1, %v913_v16 }
  0x28   : > { %866 = vmatmul.mubr.msk.bf16.gmra.mrb[4].mxu0 %vm290_vm1, %v914_v17 }
  0xe6   : > { %v843_v18 = vpop.f32.mrb[0].mxu1 }
  0xe7   : > { %v341_v19 = vpop.f32.mrb[1].mxu1 }
  0xe8   : > { %v844_v20 = vpop.f32.mrb[2].mxu1 }
  0xe9   : > { %v344_v21 = vpop.f32.mrb[3].mxu1 }
  0xf3   : > { %v863_v22 = vpop.f32.mrb[0].mxu0 }
  0xf4   : > { %v871_v24 = vadd.f32 %v863_v22, %v843_v18  ;;  %v562_v25 = vpop.f32.mrb[1].mxu0 }
  0xf5   : > { %v872_v26 = vadd.f32 %v562_v25, %v341_v19  ;;  %v864_v27 = vpop.f32.mrb[2].mxu0 }
  0xf6   : > { %v610_v28 = vadd.f32 %v871_v24, %v820_v23  ;;  %v873_v29 = vadd.f32 %v864_v27, %v844_v20  ;;  %v565_v30 = vpop.f32.mrb[3].mxu0 }
  0xf7   : > { %v608_v31 = vadd.f32 %v872_v26, %v820_v23  ;;  %v874_v32 = vadd.f32 %v565_v30, %v344_v21 }
  0xf8   : > { %v618_v33 = vmax.f32 %v610_v28, 0.0  ;;  %v611_v34 = vadd.f32 %v873_v29, %v820_v23 }
  0xf9   : > { %v616_v35 = vmax.f32 %v608_v31, 0.0  ;;  %v609_v36 = vadd.f32 %v874_v32, %v820_v23 }
  0xfa   : > { %626 = vst [vmem:[%s1002_s10 + $0x10] sm:$0xff] %v618_v33  ;;  %v619_v37 = vmax.f32 %v611_v34, 0.0  ;;  %v857_v38 = vpop.f32.mrb[4].mxu1  ;;  %v648_v51 = vmul.f32 %v618_v33, %v618_v33 }
  0xfb   : > { %624 = vst [vmem:[%s1002_s10] sm:$0xff] %v616_v35  ;;  %v617_v39 = vmax.f32 %v609_v36, 0.0  ;;  %v867_v40 = vpop.f32.mrb[4].mxu0  ;;  %v462_v41 = vpop.f32.mrb[5].mxu1  ;;  %v646_v45 = vmul.f32 %v616_v35, %v616_v35 }
  0xfc   : > { %627 = vst [vmem:[%s1002_s10 + $0x18] sm:$0xff] %v619_v37  ;;  %v875_v42 = vadd.f32 %v867_v40, %v857_v38  ;;  %v578_v43 = vpop.f32.mrb[5].mxu0  ;;  %v858_v44 = vpop.f32.mrb[6].mxu1  ;;  %v649_v59 = vmul.f32 %v619_v37, %v619_v37 }
  0xfd   : > { %625 = vst [vmem:[%s1002_s10 + $0x8] sm:$0xff] %v617_v39  ;;  %v632_v46 = vadd.f32 %v617_v39, %v616_v35  ;;  %v647_v47 = vmul.f32 %v617_v39, %v617_v39  ;;  %v876_v48 = vadd.f32 %v578_v43, %v462_v41  ;;  %v868_v49 = vpop.f32.mrb[6].mxu0  ;;  %v465_v50 = vpop.f32.mrb[7].mxu1 }
  0xfe   : > { %v614_v52 = vadd.f32 %v875_v42, %v820_v23  ;;  %v877_v53 = vadd.f32 %v868_v49, %v858_v44  ;;  %v581_v54 = vpop.f32.mrb[7].mxu0 }
  0xff   : > { %v633_v55 = vadd.f32 %v632_v46, %v618_v33  ;;  %v654_v56 = vadd.f32 %v647_v47, %v646_v45  ;;  %v612_v57 = vadd.f32 %v876_v48, %v820_v23  ;;  %v878_v58 = vadd.f32 %v581_v54, %v465_v50 }
 0x100   : > { %v622_v60 = vmax.f32 %v614_v52, 0.0  ;;  %v615_v61 = vadd.f32 %v877_v53, %v820_v23 }
 0x101   : > { %v655_v62 = vadd.f32 %v654_v56, %v648_v51  ;;  %v620_v63 = vmax.f32 %v612_v57, 0.0  ;;  %v634_v0 = vadd.f32 %v633_v55, %v619_v37  ;;  %v613_v1 = vadd.f32 %v878_v58, %v820_v23 }
 0x102   : > { %630 = vst [vmem:[%s1002_s10 + $0x30] sm:$0xff] %v622_v60  ;;  %v623_v2 = vmax.f32 %v615_v61, 0.0  ;;  %v652_v10 = vmul.f32 %v622_v60, %v622_v60 }
 0x103   : > { %628 = vst [vmem:[%s1002_s10 + $0x20] sm:$0xff] %v620_v63  ;;  %v635_v3 = vadd.f32 %v634_v0, %v620_v63  ;;  %v650_v4 = vmul.f32 %v620_v63, %v620_v63  ;;  %v656_v5 = vadd.f32 %v655_v62, %v649_v59  ;;  %v621_v6 = vmax.f32 %v613_v1, 0.0 }
 0x104   : > { %631 = vst [vmem:[%s1002_s10 + $0x38] sm:$0xff] %v623_v2  ;;  %v653_v13 = vmul.f32 %v623_v2, %v623_v2 }
 0x105   : > { %v657_v7 = vadd.f32 %v656_v5, %v650_v4  ;;  %629 = vst [vmem:[%s1002_s10 + $0x28] sm:$0xff] %v621_v6  ;;  %v636_v8 = vadd.f32 %v635_v3, %v621_v6  ;;  %v651_v9 = vmul.f32 %v621_v6, %v621_v6 }
 0x107   : > { %v637_v11 = vadd.f32 %v636_v8, %v622_v60  ;;  %v658_v12 = vadd.f32 %v657_v7, %v651_v9 }
 0x109   : > { %v638_v14 = vadd.f32 %v637_v11, %v623_v2  ;;  %v659_v15 = vadd.f32 %v658_v12, %v652_v10 }
 0x10b   : > { %v639_v16 = vrot.slane %v638_v14, 4  ;;  %v660_v17 = vadd.f32 %v659_v15, %v653_v13 }
 0x10d   : > { %v640_v18 = vadd.f32 %v639_v16, %v638_v14  ;;  %v661_v19 = vrot.slane %v660_v17, 4 }
 0x10f   : > { %v641_v20 = vrot.slane %v640_v18, 2  ;;  %v662_v21 = vadd.f32 %v661_v19, %v660_v17 }
 0x111   : > { %v642_v22 = vadd.f32 %v641_v20, %v640_v18  ;;  %v663_v23 = vrot.slane %v662_v21, 2 }
 0x113   : > { %v643_v24 = vrot.slane %v642_v22, 1  ;;  %v664_v25 = vadd.f32 %v663_v23, %v662_v21 }
 0x115   : > { %v644_v26 = vadd.f32 %v643_v24, %v642_v22  ;;  %v665_v27 = vrot.slane %v664_v25, 1 }
 0x117   : > { %645 = vst [vmem:[%s238_s13] sm:$0x1] %v644_v26  ;;  %v666_v28 = vadd.f32 %v665_v27, %v664_v25 }
 0x119   : > { %667 = vst [vmem:[%s241_s16] sm:$0x1] %v666_v28 }
 0x11a PF: > { %s16_s18 = sadd.s32 1, %s921_s18  }
 0x11b   : > { %p13_p4 = scmp.ge.s32.totalorder %s16_s18, 4  }
 0x11d   :  { %15 = sbr.rel (!%p13_p4) target bundleno = 1 (0x1), region = 89 }

// kernel: forward.8
= control target key start
LH: loop header
LB: loop body
LE: loop exit
PB: predicated region body
PF: predicated region fallthrough
CT: control target
= control target key end

     0   :  { %s292_s12 = smov 0   ;;  %s328_s0 = inlined_call_operand.vmem [shape: f32[2,16,128], index: 0, kind: input, shape index: {}]   ;;  %s329_s1 = inlined_call_operand.vmem [shape: f32[1,128], index: 1, kind: input, shape index: {}]   ;;  %s330_s2 = inlined_call_operand.vmem [shape: f32[1,128], index: 2, kind: input, shape index: {}]   ;;  %s331_s3 = inlined_call_operand.vmem [shape: bf16[2,16,128], index: 3, kind: output, shape index: {}]  }
   0x1 LB: > { %s256_s13 = sadd.s32 4294967295, %s294_s12   ;;  %p260_p0 = scmp.ge.s32.totalorder %s294_s12, 1  ;;  %s294_s12 = sphi %s292_s12, %s13_s12  }
   0x2   : > { %p137_p1 = scmp.lt.s32.totalorder %s294_s12, 3 }
   0x4   : > { %p138_p2 = pnand %p260_p0, %p137_p1 }
   0x5   : > { %p161_p3 = scmp.lt.s32.totalorder (!%p138_p2), %s256_s13, 1  ;;  %v265_v0 = vld [vmem:[%s329_s1] ss:$0 sm:$0xff] (!%p138_p2) }
   0x6   : > { %141 = sbr.rel (%p138_p2) target bundleno = 24 (0x18), region = 32  ;;  %v266_v3 = vld [vmem:[%s330_s2] ss:$0 sm:$0xff] (!%p138_p2) }
   0xd   : > { %s333_s13 = smov (!%p161_p3, %s256_s13), 1 }
   0xe   : > { %s271_s14 = sshll.u32 %s333_s13, 4  ;;  %s272_s22 = sshll.u32 %s333_s13, 3 }
   0xf   : > { %s165_s19 = scalar_lea.vmem %s328_s0, %s271_s14  ;;  %s170_s25 = scalar_lea.vmem %s331_s3, %s272_s22 }
  0x10   : > { %v171_v1 = vld [vmem:[%s165_s19] sm:$0xff]  ;;  %v172_v2 = vld [vmem:[%s165_s19 + $0x8] sm:$0xff] }
  0x11   : > { %v180_v4 = vmul.f32 %v265_v0, %v171_v1  ;;  %v181_v5 = vmul.f32 %v265_v0, %v172_v2 }
  0x13   : > { %v189_v6 = vadd.f32 %v266_v3, %v180_v4  ;;  %v190_v7 = vadd.f32 %v266_v3, %v181_v5 }
  0x15   : > { %v278_v8 = vpack.c.bf16 %v190_v7, %v189_v6 }
  0x17   : > { %279 = vst [vmem:[%s170_s25] sm:$0xff] %v278_v8  }
  0x18 PF: > { %s13_s12 = sadd.s32 1, %s294_s12  }
  0x19   : > { %p10_p4 = scmp.ge.s32.totalorder %s13_s12, 4  }
  0x1b   :  { %12 = sbr.rel (!%p10_p4) target bundleno = 1 (0x1), region = 62 }

// kernel: forward.7
= control target key start
LH: loop header
LB: loop body
LE: loop exit
PB: predicated region body
PF: predicated region fallthrough
CT: control target
= control target key end

     0   :  { %s719_s18 = smov 0   ;;  %s778_s0 = inlined_call_operand.vmem [shape: bf16[2,2,20,24], index: 0, kind: input, shape index: {}]   ;;  %s779_s1 = inlined_call_operand.vmem [shape: bf16[3,24,128], index: 1, kind: input, shape index: {}]   ;;  %s780_s2 = inlined_call_operand.vmem [shape: f32[1,128], index: 2, kind: input, shape index: {}]   ;;  %s781_s3 = inlined_call_operand.vmem [shape: f32[2,16,128], index: 3, kind: output, shape index: {0}]   ;;  %s782_s4 = inlined_call_operand.vmem [shape: f32[2,1,128], index: 4, kind: output, shape index: {1}]   ;;  %s783_s5 = inlined_call_operand.vmem [shape: f32[2,1,128], index: 5, kind: output, shape index: {2}]  }
   0x1 LB: > { %s592_s19 = sadd.s32 4294967295, %s685_s18   ;;  %p596_p0 = scmp.ge.s32.totalorder %s685_s18, 1  ;;  %s685_s18 = sphi %s719_s18, %s16_s18  }
   0x2   : > { %p192_p1 = scmp.lt.s32.totalorder %s685_s18, 3 }
   0x4   : > { %p193_p2 = pnand %p596_p0, %p192_p1 }
   0x5   : > { %v669_v0 = vld [vmem:[%s779_s1 + $0xc] sm:$0xff] (!%p193_p2)   ;;  %v687_v1 = vmov (!%p193_p2), 0.0   ;;  %v670_v2 = vld [vmem:[%s779_s1] sm:$0xff] (!%p193_p2)   ;;  %vm273_vm0 = vcmask (!%p193_p2), 1043456   ;;  %v671_v3 = vld [vmem:[%s779_s1 + $0x14] ss:$0 sps:$4 sm:$0xff] (!%p193_p2)  }
   0x6   : > { %196 = sbr.rel (%p193_p2) target bundleno = 263 (0x107), region = 32  ;;  %634 = vmatprep.subr.bf16.mxu0 (!%p193_p2), %v687_v1  ;;  %642 = vmatprep.subr.bf16.mxu1 (!%p193_p2), %v687_v1  ;;  %v672_v4 = vld [vmem:[%s779_s1 + $0x8] ss:$0 sps:$4 sm:$0xff] (!%p193_p2)   ;;  %p226_p3 = scmp.lt.s32.totalorder (!%p193_p2), %s592_s19, 1  ;;  %v275_v5 = vsel (!%p193_p2), %vm273_vm0, %v671_v3, 0  ;;  %vm688_vm1 = vmmov (!%p193_p2), 0  }
   0x7   : > { %635 = vmatpush3.bf16.msra.mxu0 (!%p193_p2), %v669_v0  ;;  %643 = vmatpush3.bf16.msra.mxu1 (!%p193_p2), %v670_v2  ;;  %v336_v6 = vsel (!%p193_p2), %vm273_vm0, %v672_v4, 0  ;;  %vm269_vm2 = vcmask (!%p193_p2), 195584   ;;  %v675_v7 = vld [vmem:[%s779_s1 + $0x18] sm:$0xff] (!%p193_p2)   ;;  %v676_v8 = vld [vmem:[%s779_s1 + $0x20] ss:$0 sps:$4 sm:$0xff] (!%p193_p2)   ;;  %vm394_vm3 = vcmask (!%p193_p2), 1045504  }
   0x8   : > { %636 = vmatprep.subr.bf16.mxu0 (!%p193_p2), %v687_v1  ;;  %644 = vmatprep.subr.bf16.mxu1 (!%p193_p2), %v687_v1  ;;  %v411_v13 = vsel (!%p193_p2), %vm273_vm0, %v676_v8, 0  ;;  %v621_v28 = vld [vmem:[%s780_s2] ss:$0 sm:$0xff] (!%p193_p2) }
   0x9   : > { %638 = vmatprep.mubr.msk.bf16.mxu0 (!%p193_p2), %vm688_vm1, %v687_v1  ;;  %646 = vmatprep.mubr.msk.bf16.mxu1 (!%p193_p2), %vm688_vm1, %v687_v1 }
   0xb   : > { %637 = vmatpush3.bf16.msra.mxu0 (!%p193_p2), %v275_v5  ;;  %645 = vmatpush3.bf16.msra.mxu1 (!%p193_p2), %v336_v6 }
   0xc   : > { %650 = vmatprep.subr.bf16.mxu0 (!%p193_p2), %v687_v1 }
   0xd   : > { %s785_s19 = smov (!%p226_p3, %s592_s19), 1 }
   0xe   : > { %s658_s28 = smul.u32 24, %s785_s19  ;;  %s624_s13 = sshll.u32 %s785_s19, 4 }
   0xf   : > { %s235_s16 = scalar_lea.vmem %s781_s3, %s624_s13  ;;  %s238_s21 = scalar_lea.vmem %s782_s4, %s785_s19 }
  0x10   : > { %s230_s6 = scalar_lea.vmem %s778_s0, %s658_s28  ;;  %s241_s24 = scalar_lea.vmem %s783_s5, %s785_s19 }
  0x11   : > { %v673_v9 = vld [vmem:[%s230_s6 + $0xc] sm:$0xff]   ;;  %v674_v10 = vld [vmem:[%s230_s6] sm:$0xff]   ;;  %v678_v12 = vld [vmem:[%s230_s6 + $0x8] ss:$0 sps:$4 sm:$0x33]  }
  0x12   : > { %639 = vmatmul.mubr.msk.bf16.vlgmr.msra.gmra.mrb[0].mxu0 %vm269_vm2, %v673_v9  ;;  %647 = vmatmul.mubr.msk.bf16.vlgmr.msra.gmra.mrb[0].mxu1 %vm269_vm2, %v674_v10  ;;  %v677_v11 = vld [vmem:[%s230_s6] sm:$0xfc]   ;;  %v396_v15 = vrot.slane %v678_v12, 2 }
  0x13   : > { %651 = vmatpush3.bf16.msra.mxu0 %v675_v7  ;;  %654 = vmatprep.mubr.msk.bf16.mxu0 %vm688_vm1, %v687_v1  ;;  %v395_v14 = vrot.slane %v677_v11, 2 }
  0x14   : > { %652 = vmatprep.subr.bf16.mxu0 %v687_v1 }
  0x15   : > { %v397_v16 = vsel %vm394_vm3, %v395_v14, %v396_v15 }
  0x17   : > { %653 = vmatpush3.bf16.msra.mxu0 %v411_v13 }
  0x1a   : > { %655 = vmatmul.mubr.msk.bf16.vlgmr.msra.gmra.mrb[4].mxu0 %vm269_vm2, %v397_v16 }
  0xe5   : > { %v311_v17 = vpop.f32.mrb[0].mxu0  ;;  %v372_v18 = vpop.f32.mrb[0].mxu1 }
  0xe6   : > { %v640_v19 = vpop.f32.mrb[1].mxu0  ;;  %v373_v20 = vadd.f32 %v372_v18, %v311_v17  ;;  %v648_v21 = vpop.f32.mrb[1].mxu1 }
  0xe7   : > { %v314_v22 = vpop.f32.mrb[2].mxu0  ;;  %v375_v23 = vpop.f32.mrb[2].mxu1 }
  0xe8   : > { %v641_v24 = vpop.f32.mrb[3].mxu0  ;;  %v376_v25 = vadd.f32 %v375_v23, %v314_v22  ;;  %v649_v26 = vpop.f32.mrb[3].mxu1 }
  0xed   : > { %v447_v27 = vpop.f32.mrb[4].mxu0 }
  0xee   : > { %v454_v29 = vadd.f32 %v447_v27, %v373_v20  ;;  %v656_v30 = vpop.f32.mrb[5].mxu0 }
  0xef   : > { %v450_v31 = vpop.f32.mrb[6].mxu0 }
  0xf0   : > { %v463_v32 = vadd.f32 %v621_v28, %v454_v29  ;;  %v455_v33 = vadd.f32 %v450_v31, %v376_v25  ;;  %v657_v34 = vpop.f32.mrb[7].mxu0 }
  0xf2   : > { %v465_v35 = vmax.f32 %v463_v32, 0.0  ;;  %v464_v36 = vadd.f32 %v621_v28, %v455_v33 }
  0xf4   : > { %467 = vst [vmem:[%s235_s16] sm:$0xff] %v465_v35  ;;  %v466_v37 = vmax.f32 %v464_v36, 0.0  ;;  %v477_v38 = vmul.f32 %v465_v35, %v465_v35 }
  0xf6   : > { %468 = vst [vmem:[%s235_s16 + $0x8] sm:$0xff] %v466_v37  ;;  %v469_v39 = vadd.f32 %v466_v37, %v465_v35  ;;  %v478_v40 = vmul.f32 %v466_v37, %v466_v37 }
  0xf8   : > { %v470_v41 = vrot.slane %v469_v39, 4  ;;  %v479_v42 = vadd.f32 %v478_v40, %v477_v38 }
  0xfa   : > { %v471_v43 = vadd.f32 %v470_v41, %v469_v39  ;;  %v480_v44 = vrot.slane %v479_v42, 4 }
  0xfc   : > { %v472_v45 = vrot.slane %v471_v43, 2  ;;  %v481_v46 = vadd.f32 %v480_v44, %v479_v42 }
  0xfe   : > { %v473_v47 = vadd.f32 %v472_v45, %v471_v43  ;;  %v482_v48 = vrot.slane %v481_v46, 2 }
 0x100   : > { %v474_v49 = vrot.slane %v473_v47, 1  ;;  %v483_v50 = vadd.f32 %v482_v48, %v481_v46 }
 0x102   : > { %v475_v51 = vadd.f32 %v474_v49, %v473_v47  ;;  %v484_v52 = vrot.slane %v483_v50, 1 }
 0x104   : > { %476 = vst [vmem:[%s238_s21] sm:$0x1] %v475_v51  ;;  %v485_v53 = vadd.f32 %v484_v52, %v483_v50 }
 0x106   : > { %486 = vst [vmem:[%s241_s24] sm:$0x1] %v485_v53 }
 0x107 PF: > { %s16_s18 = sadd.s32 1, %s685_s18  }
 0x108   : > { %p13_p4 = scmp.ge.s32.totalorder %s16_s18, 4  }
 0x10a   :  { %15 = sbr.rel (!%p13_p4) target bundleno = 1 (0x1), region = 89 }

// kernel: forward.9
= control target key start
LH: loop header
LB: loop body
LE: loop exit
PB: predicated region body
PF: predicated region fallthrough
CT: control target
= control target key end

     0   :  { %v286_v28 = vlaneseq  ;;  %v1975_v36 = vmov 1966171168   ;;  %s2427_s0 = inlined_call_operand.vmem [shape: bf16[2,2048], index: 0, kind: input, shape index: {}]   ;;  %s2428_s1 = inlined_call_operand.vmem [shape: bf16[2048,128], index: 1, kind: input, shape index: {}]   ;;  %s2429_s2 = inlined_call_operand.vmem [shape: f32[1,128], index: 2, kind: input, shape index: {}]   ;;  %s2430_s3 = inlined_call_operand.hbm [shape: f32[2,128], index: 3, kind: output, shape index: {}]  }
   0x1   :  { %v1821_v0 = vld [vmem:[%s2428_s1 + $0x40] sm:$0xff]   ;;  %v1825_v4 = vld [vmem:[%s2428_s1 + $0x48] sm:$0xff]   ;;  %v1829_v8 = vld [vmem:[%s2428_s1 + $0x50] sm:$0xff]   ;;  %v284_v37 = vunpack.c.l.s4 %v1975_v36 }
   0x2   :  { %v1822_v1 = vld [vmem:[%s2428_s1 + $0xc0] sm:$0xff]   ;;  %1642 = vmatprep.subr.bf16.mxu0 %v1821_v0  ;;  %v1826_v5 = vld [vmem:[%s2428_s1 + $0xc8] sm:$0xff]   ;;  %v1830_v9 = vld [vmem:[%s2428_s1 + $0xd0] sm:$0xff]   ;;  %v287_v33 = vshrl.u32 %v286_v28, 7 }
   0x3   :  { %v1823_v2 = vld [vmem:[%s2428_s1] sm:$0xff]   ;;  %1664 = vmatprep.subr.bf16.mxu1 %v1822_v1  ;;  %v1827_v6 = vld [vmem:[%s2428_s1 + $0x8] sm:$0xff]   ;;  %v1831_v10 = vld [vmem:[%s2428_s1 + $0x10] sm:$0xff]   ;;  %v285_v40 = vunpack.c.0.s8 %v284_v37 }
   0x4   :  { %v1824_v3 = vld [vmem:[%s2428_s1 + $0x80] sm:$0xff]   ;;  %1643 = vmatpush3.bf16.msra.mxu0 %v1823_v2  ;;  %v1828_v7 = vld [vmem:[%s2428_s1 + $0x88] sm:$0xff]   ;;  %v1832_v11 = vld [vmem:[%s2428_s1 + $0x90] sm:$0xff]  }
   0x5   :  { %1665 = vmatpush3.bf16.msra.mxu1 %v1824_v3  ;;  %1644 = vmatprep.subr.bf16.mxu0 %v1825_v4  ;;  %v1833_v12 = vld [vmem:[%s2428_s1 + $0x58] sm:$0xff]   ;;  %v1837_v16 = vld [vmem:[%s2428_s1 + $0x60] sm:$0xff]   ;;  %v1841_v20 = vld [vmem:[%s2428_s1 + $0x68] sm:$0xff]   ;;  %v2103_v41 = vsub.s32 %v285_v40, %v287_v33 }
   0x6   :  { %1666 = vmatprep.subr.bf16.mxu1 %v1826_v5  ;;  %v1834_v13 = vld [vmem:[%s2428_s1 + $0xd8] sm:$0xff]   ;;  %v1838_v17 = vld [vmem:[%s2428_s1 + $0xe0] sm:$0xff]   ;;  %v1842_v21 = vld [vmem:[%s2428_s1 + $0xe8] sm:$0xff]  }
   0x7   :  { %v1835_v14 = vld [vmem:[%s2428_s1 + $0x18] sm:$0xff]   ;;  %v1839_v18 = vld [vmem:[%s2428_s1 + $0x20] sm:$0xff]   ;;  %v1843_v22 = vld [vmem:[%s2428_s1 + $0x28] sm:$0xff]  }
   0x8   :  { %1645 = vmatpush3.bf16.msra.mxu0 %v1827_v6  ;;  %v1836_v15 = vld [vmem:[%s2428_s1 + $0x98] sm:$0xff]   ;;  %v1840_v19 = vld [vmem:[%s2428_s1 + $0xa0] sm:$0xff]   ;;  %v1844_v23 = vld [vmem:[%s2428_s1 + $0xa8] sm:$0xff]  }
   0x9   :  { %1667 = vmatpush3.bf16.msra.mxu1 %v1828_v7  ;;  %1646 = vmatprep.subr.bf16.mxu0 %v1829_v8  ;;  %v1845_v24 = vld [vmem:[%s2428_s1 + $0x70] sm:$0xff]   ;;  %v1849_v29 = vld [vmem:[%s2428_s1 + $0x78] sm:$0xff]   ;;  %v22_v34 = vld [vmem:[%s2427_s0] sm:$0xff] }
   0xa   :  { %1668 = vmatprep.subr.bf16.mxu1 %v1830_v9  ;;  %v1846_v25 = vld [vmem:[%s2428_s1 + $0xf0] sm:$0xff]   ;;  %v1850_v30 = vld [vmem:[%s2428_s1 + $0xf8] sm:$0xff]   ;;  %v1854_v35 = vld [vmem:[%s2428_s1 + $0x140] sm:$0xff]   ;;  %v282_v39 = vcombine.high %v22_v34, %v22_v34  ;;  %v289_v42 = vrot.slane %v22_v34, %v2103_v41 }
   0xb   :  { %v1847_v26 = vld [vmem:[%s2428_s1 + $0x30] sm:$0xff]   ;;  %v1851_v31 = vld [vmem:[%s2428_s1 + $0x38] sm:$0xff]   ;;  %v1855_v38 = vld [vmem:[%s2428_s1 + $0x1c0] sm:$0xff]  }
   0xc   :  { %1647 = vmatpush3.bf16.msra.mxu0 %v1831_v10  ;;  %v1848_v27 = vld [vmem:[%s2428_s1 + $0xb0] sm:$0xff]   ;;  %v1852_v32 = vld [vmem:[%s2428_s1 + $0xb8] sm:$0xff]   ;;  %v2107_v43 = vrot.slane %v282_v39, %v2103_v41  ;;  %v297_v44 = vcombine.high %v289_v42, %v289_v42  ;;  %v305_v45 = vrot.slane %v289_v42, %v2103_v41  ;;  %v1856_v48 = vld [vmem:[%s2428_s1 + $0x100] sm:$0xff]  }
   0xd   :  { %1669 = vmatpush3.bf16.msra.mxu1 %v1832_v11  ;;  %1648 = vmatprep.subr.bf16.mxu0 %v1833_v12  ;;  %v1858_v51 = vld [vmem:[%s2428_s1 + $0x148] sm:$0xff]   ;;  %v1857_v53 = vld [vmem:[%s2428_s1 + $0x180] sm:$0xff]   ;;  %v1862_v57 = vld [vmem:[%s2428_s1 + $0x150] sm:$0xff]  }
   0xe   :  { %1670 = vmatprep.subr.bf16.mxu1 %v1834_v13  ;;  %v298_v46 = vcombine.high %v2107_v43, %v2107_v43  ;;  %v319_v47 = vrot.slane %v297_v44, %v2103_v41  ;;  %v327_v50 = vcombine.high %v305_v45, %v305_v45  ;;  %v1859_v54 = vld [vmem:[%s2428_s1 + $0x1c8] sm:$0xff]   ;;  %v1863_v59 = vld [vmem:[%s2428_s1 + $0x1d0] sm:$0xff]   ;;  %v1866_v61 = vld [vmem:[%s2428_s1 + $0x158] sm:$0xff]  }
   0xf   :  { %v1860_v56 = vld [vmem:[%s2428_s1 + $0x108] sm:$0xff]   ;;  %v1864_v60 = vld [vmem:[%s2428_s1 + $0x110] sm:$0xff]   ;;  %v1867_v63 = vld [vmem:[%s2428_s1 + $0x1d8] sm:$0xff]  }
  0x10   :  { %1649 = vmatpush3.bf16.msra.mxu0 %v1835_v14  ;;  %v326_v49 = vrot.slane %v298_v46, %v2103_v41  ;;  %1196 = vmatprep.mubr.bf16.mxu0 %v319_v47  ;;  %v329_v52 = vcombine.high %v319_v47, %v319_v47  ;;  %v1861_v58 = vld [vmem:[%s2428_s1 + $0x188] sm:$0xff]   ;;  %v1865_v62 = vld [vmem:[%s2428_s1 + $0x190] sm:$0xff]   ;;  %v1868_v0 = vld [vmem:[%s2428_s1 + $0x118] sm:$0xff]  }
  0x11   :  { %1671 = vmatpush3.bf16.msra.mxu1 %v1836_v15  ;;  %1650 = vmatprep.subr.bf16.mxu0 %v1837_v16  ;;  %v1870_v1 = vld [vmem:[%s2428_s1 + $0x160] sm:$0xff]   ;;  %v1869_v2 = vld [vmem:[%s2428_s1 + $0x198] sm:$0xff]   ;;  %v1874_v5 = vld [vmem:[%s2428_s1 + $0x168] sm:$0xff]  }
  0x12   :  { %1672 = vmatprep.subr.bf16.mxu1 %v1838_v17  ;;  %v330_v55 = vcombine.high %v326_v49, %v326_v49  ;;  %1236 = vmatprep.mubr.bf16.mxu1 %v329_v52  ;;  %v1871_v3 = vld [vmem:[%s2428_s1 + $0x1e0] sm:$0xff]   ;;  %v1875_v7 = vld [vmem:[%s2428_s1 + $0x1e8] sm:$0xff]   ;;  %v1878_v9 = vld [vmem:[%s2428_s1 + $0x170] sm:$0xff]   ;;  %v312_v17 = vrot.slane %v2107_v43, %v2103_v41 }
  0x13   :  { %v1872_v4 = vld [vmem:[%s2428_s1 + $0x120] sm:$0xff]   ;;  %v1876_v8 = vld [vmem:[%s2428_s1 + $0x128] sm:$0xff]   ;;  %v1879_v11 = vld [vmem:[%s2428_s1 + $0x1f0] sm:$0xff]  }
  0x14   :  { %1651 = vmatpush3.bf16.msra.mxu0 %v1839_v18  ;;  %v1873_v6 = vld [vmem:[%s2428_s1 + $0x1a0] sm:$0xff]   ;;  %v1877_v10 = vld [vmem:[%s2428_s1 + $0x1a8] sm:$0xff]   ;;  %v1880_v12 = vld [vmem:[%s2428_s1 + $0x130] sm:$0xff]  }
  0x15   :  { %1673 = vmatpush3.bf16.msra.mxu1 %v1840_v19  ;;  %1652 = vmatprep.subr.bf16.mxu0 %v1841_v20  ;;  %v1882_v13 = vld [vmem:[%s2428_s1 + $0x178] sm:$0xff]   ;;  %v1881_v14 = vld [vmem:[%s2428_s1 + $0x1b0] sm:$0xff]   ;;  %v1886_v18 = vld [vmem:[%s2428_s1 + $0x240] sm:$0xff]  }
  0x16   :  { %1674 = vmatprep.subr.bf16.mxu1 %v1842_v21  ;;  %v1883_v15 = vld [vmem:[%s2428_s1 + $0x1f8] sm:$0xff]   ;;  %v1887_v20 = vld [vmem:[%s2428_s1 + $0x2c0] sm:$0xff]   ;;  %v1893_v28 = vld [vmem:[%s2428_s1 + $0x288] sm:$0xff]  }
  0x17   :  { %v1884_v16 = vld [vmem:[%s2428_s1 + $0x138] sm:$0xff]   ;;  %v1888_v21 = vld [vmem:[%s2428_s1 + $0x200] sm:$0xff]   ;;  %v1906_v39 = vld [vmem:[%s2428_s1 + $0x268] sm:$0xff]  }
  0x18   :  { %1653 = vmatpush3.bf16.msra.mxu0 %v1843_v22  ;;  %v1885_v19 = vld [vmem:[%s2428_s1 + $0x1b8] sm:$0xff]   ;;  %v328_v22 = vcombine.high %v312_v17, %v312_v17  ;;  %v1903_v37 = vld [vmem:[%s2428_s1 + $0x2e0] sm:$0xff]   ;;  %v1907_v42 = vld [vmem:[%s2428_s1 + $0x2e8] sm:$0xff]  }
  0x19   :  { %1675 = vmatpush3.bf16.msra.mxu1 %v1844_v23  ;;  %1654 = vmatprep.subr.bf16.mxu0 %v1845_v24  ;;  %v1890_v23 = vld [vmem:[%s2428_s1 + $0x248] sm:$0xff]   ;;  %v1889_v24 = vld [vmem:[%s2428_s1 + $0x280] sm:$0xff]   ;;  %v1899_v33 = vld [vmem:[%s2428_s1 + $0x2d8] sm:$0xff]  }
  0x1a   :  { %1676 = vmatprep.subr.bf16.mxu1 %v1846_v25  ;;  %v1891_v25 = vld [vmem:[%s2428_s1 + $0x2c8] sm:$0xff]   ;;  %v1900_v34 = vld [vmem:[%s2428_s1 + $0x218] sm:$0xff]   ;;  %v1905_v40 = vld [vmem:[%s2428_s1 + $0x2a0] sm:$0xff]  }
  0x1b   :  { %v1901_v36 = vld [vmem:[%s2428_s1 + $0x298] sm:$0xff]   ;;  %v1908_v43 = vld [vmem:[%s2428_s1 + $0x228] sm:$0xff]   ;;  %v1910_v44 = vld [vmem:[%s2428_s1 + $0x270] sm:$0xff]  }
  0x1c   :  { %1655 = vmatpush3.bf16.msra.mxu0 %v1847_v26  ;;  %v1892_v26 = vld [vmem:[%s2428_s1 + $0x208] sm:$0xff]  }
  0x1d   :  { %1677 = vmatpush3.bf16.msra.mxu1 %v1848_v27  ;;  %1656 = vmatprep.subr.bf16.mxu0 %v1849_v29  ;;  %v1894_v27 = vld [vmem:[%s2428_s1 + $0x250] sm:$0xff]   ;;  %v1909_v46 = vld [vmem:[%s2428_s1 + $0x2a8] sm:$0xff]  }
  0x1e   :  { %1678 = vmatprep.subr.bf16.mxu1 %v1850_v30  ;;  %v1895_v29 = vld [vmem:[%s2428_s1 + $0x2d0] sm:$0xff]  }
  0x1f   :  { %v1896_v30 = vld [vmem:[%s2428_s1 + $0x210] sm:$0xff]  }
  0x20   :  { %1657 = vmatpush3.bf16.msra.mxu0 %v1851_v31  ;;  %v1898_v31 = vld [vmem:[%s2428_s1 + $0x258] sm:$0xff]  }
  0x21   :  { %1679 = vmatpush3.bf16.msra.mxu1 %v1852_v32  ;;  %1686 = vmatprep.subr.bf16.mxu0 %v1854_v35  ;;  %v1897_v32 = vld [vmem:[%s2428_s1 + $0x290] sm:$0xff]   ;;  %v1902_v35 = vld [vmem:[%s2428_s1 + $0x260] sm:$0xff]  }
  0x22   :  { %1708 = vmatprep.subr.bf16.mxu1 %v1855_v38  ;;  %v1904_v38 = vld [vmem:[%s2428_s1 + $0x220] sm:$0xff]  }
  0x23   :  { %1197 = vmatmul.mubr.bf16.vlgmr.msra.gmra.mrb[0].mxu0 %v305_v45  ;;  %v23_v45 = vld [vmem:[%s2427_s0 + $0x8] sm:$0xff] }
  0x24   :  { %1687 = vmatpush3.bf16.msra.mxu0 %v1856_v48  ;;  %1237 = vmatmul.mubr.bf16.vlgmr.msra.gmra.mrb[0].mxu1 %v327_v50  ;;  %v338_v47 = vrot.slane %v23_v45, %v2103_v41  ;;  %v331_v48 = vcombine.high %v23_v45, %v23_v45  ;;  %v1912_v50 = vld [vmem:[%s2428_s1 + $0x230] sm:$0xff]  }
  0x25   :  { %1688 = vmatprep.subr.bf16.mxu0 %v1858_v51  ;;  %1709 = vmatpush3.bf16.msra.mxu1 %v1857_v53  ;;  %v1914_v53 = vld [vmem:[%s2428_s1 + $0x278] sm:$0xff]  }
  0x26   :  { %1276 = vmatprep.mubr.bf16.mxu0 %v326_v49  ;;  %1710 = vmatprep.subr.bf16.mxu1 %v1859_v54  ;;  %v1911_v49 = vld [vmem:[%s2428_s1 + $0x2f0] sm:$0xff]   ;;  %v346_v51 = vcombine.high %v338_v47, %v338_v47  ;;  %v2292_v52 = vrot.slane %v331_v48, %v2103_v41 }
  0x27   :  { %1316 = vmatprep.mubr.bf16.mxu1 %v330_v55  ;;  %v1913_v54 = vld [vmem:[%s2428_s1 + $0x2b0] sm:$0xff]  }
  0x28   :  { %1689 = vmatpush3.bf16.msra.mxu0 %v1860_v56  ;;  %v368_v55 = vrot.slane %v346_v51, %v2103_v41  ;;  %v347_v56 = vcombine.high %v2292_v52, %v2292_v52 }
  0x29   :  { %1690 = vmatprep.subr.bf16.mxu0 %v1862_v57  ;;  %1711 = vmatpush3.bf16.msra.mxu1 %v1861_v58  ;;  %v1915_v57 = vld [vmem:[%s2428_s1 + $0x2f8] sm:$0xff]  }
  0x2a   :  { %1712 = vmatprep.subr.bf16.mxu1 %v1863_v59  ;;  %v1916_v58 = vld [vmem:[%s2428_s1 + $0x238] sm:$0xff]   ;;  %v378_v59 = vcombine.high %v368_v55, %v368_v55 }
  0x2c   :  { %1691 = vmatpush3.bf16.msra.mxu0 %v1864_v60  ;;  %v354_v60 = vrot.slane %v338_v47, %v2103_v41 }
  0x2d   :  { %1692 = vmatprep.subr.bf16.mxu0 %v1866_v61  ;;  %1713 = vmatpush3.bf16.msra.mxu1 %v1865_v62  ;;  %v1918_v61 = vld [vmem:[%s2428_s1 + $0x340] sm:$0xff]   ;;  %v1917_v62 = vld [vmem:[%s2428_s1 + $0x2b8] sm:$0xff]  }
  0x2e   :  { %1714 = vmatprep.subr.bf16.mxu1 %v1867_v63  ;;  %v375_v63 = vrot.slane %v347_v56, %v2103_v41 }
  0x30   :  { %1693 = vmatpush3.bf16.msra.mxu0 %v1868_v0  ;;  %v1919_v0 = vld [vmem:[%s2428_s1 + $0x3c0] sm:$0xff]  }
  0x31   :  { %1694 = vmatprep.subr.bf16.mxu0 %v1870_v1  ;;  %1715 = vmatpush3.bf16.msra.mxu1 %v1869_v2  ;;  %v1920_v1 = vld [vmem:[%s2428_s1 + $0x300] sm:$0xff]   ;;  %v376_v2 = vcombine.high %v354_v60, %v354_v60 }
  0x32   :  { %1716 = vmatprep.subr.bf16.mxu1 %v1871_v3  ;;  %v1922_v3 = vld [vmem:[%s2428_s1 + $0x348] sm:$0xff]  }
  0x34   :  { %1695 = vmatpush3.bf16.msra.mxu0 %v1872_v4  ;;  %v1921_v4 = vld [vmem:[%s2428_s1 + $0x380] sm:$0xff]  }
  0x35   :  { %1696 = vmatprep.subr.bf16.mxu0 %v1874_v5  ;;  %1717 = vmatpush3.bf16.msra.mxu1 %v1873_v6  ;;  %v379_v5 = vcombine.high %v375_v63, %v375_v63  ;;  %v1923_v6 = vld [vmem:[%s2428_s1 + $0x3c8] sm:$0xff]  }
  0x36   :  { %1718 = vmatprep.subr.bf16.mxu1 %v1875_v7  ;;  %v1924_v7 = vld [vmem:[%s2428_s1 + $0x308] sm:$0xff]  }
  0x38   :  { %1697 = vmatpush3.bf16.msra.mxu0 %v1876_v8  ;;  %v1926_v8 = vld [vmem:[%s2428_s1 + $0x350] sm:$0xff]  }
  0x39   :  { %1698 = vmatprep.subr.bf16.mxu0 %v1878_v9  ;;  %1719 = vmatpush3.bf16.msra.mxu1 %v1877_v10  ;;  %v1925_v9 = vld [vmem:[%s2428_s1 + $0x388] sm:$0xff]   ;;  %v1927_v10 = vld [vmem:[%s2428_s1 + $0x3d0] sm:$0xff]  }
  0x3a   :  { %1720 = vmatprep.subr.bf16.mxu1 %v1879_v11  ;;  %v1928_v11 = vld [vmem:[%s2428_s1 + $0x310] sm:$0xff]  }
  0x3c   :  { %1699 = vmatpush3.bf16.msra.mxu0 %v1880_v12  ;;  %v1930_v12 = vld [vmem:[%s2428_s1 + $0x358] sm:$0xff]  }
  0x3d   :  { %1700 = vmatprep.subr.bf16.mxu0 %v1882_v13  ;;  %1721 = vmatpush3.bf16.msra.mxu1 %v1881_v14  ;;  %v1929_v13 = vld [vmem:[%s2428_s1 + $0x390] sm:$0xff]   ;;  %v1931_v14 = vld [vmem:[%s2428_s1 + $0x3d8] sm:$0xff]  }
  0x3e   :  { %1722 = vmatprep.subr.bf16.mxu1 %v1883_v15  ;;  %v1932_v15 = vld [vmem:[%s2428_s1 + $0x318] sm:$0xff]  }
  0x40   :  { %1701 = vmatpush3.bf16.msra.mxu0 %v1884_v16  ;;  %v1934_v16 = vld [vmem:[%s2428_s1 + $0x360] sm:$0xff]  }
  0x41   :  { %1730 = vmatprep.subr.bf16.mxu0 %v1886_v18  ;;  %1723 = vmatpush3.bf16.msra.mxu1 %v1885_v19  ;;  %v1935_v18 = vld [vmem:[%s2428_s1 + $0x3e0] sm:$0xff]  }
  0x42   :  { %1752 = vmatprep.subr.bf16.mxu1 %v1887_v20  ;;  %v1936_v19 = vld [vmem:[%s2428_s1 + $0x320] sm:$0xff]   ;;  %v1938_v20 = vld [vmem:[%s2428_s1 + $0x368] sm:$0xff]  }
  0x43   :  { %1277 = vmatmul.mubr.bf16.vlgmr.msra.gmra.mrb[4].mxu0 %v312_v17  ;;  %v1933_v17 = vld [vmem:[%s2428_s1 + $0x398] sm:$0xff]  }
  0x44   :  { %1731 = vmatpush3.bf16.msra.mxu0 %v1888_v21  ;;  %1317 = vmatmul.mubr.bf16.vlgmr.msra.gmra.mrb[4].mxu1 %v328_v22  ;;  %v1937_v21 = vld [vmem:[%s2428_s1 + $0x3a0] sm:$0xff]   ;;  %v1939_v22 = vld [vmem:[%s2428_s1 + $0x3e8] sm:$0xff]  }
  0x45   :  { %1732 = vmatprep.subr.bf16.mxu0 %v1890_v23  ;;  %1753 = vmatpush3.bf16.msra.mxu1 %v1889_v24  ;;  %v1940_v23 = vld [vmem:[%s2428_s1 + $0x328] sm:$0xff]   ;;  %v1942_v24 = vld [vmem:[%s2428_s1 + $0x370] sm:$0xff]  }
  0x46   :  { %1754 = vmatprep.subr.bf16.mxu1 %v1891_v25  ;;  %1356 = vmatprep.mubr.bf16.mxu0 %v368_v55 }
  0x47   :  { %1396 = vmatprep.mubr.bf16.mxu1 %v378_v59 }
  0x48   :  { %1733 = vmatpush3.bf16.msra.mxu0 %v1892_v26 }
  0x49   :  { %1734 = vmatprep.subr.bf16.mxu0 %v1894_v27  ;;  %1755 = vmatpush3.bf16.msra.mxu1 %v1893_v28 }
  0x4a   :  { %1756 = vmatprep.subr.bf16.mxu1 %v1895_v29 }
  0x4c   :  { %1735 = vmatpush3.bf16.msra.mxu0 %v1896_v30 }
  0x4d   :  { %1736 = vmatprep.subr.bf16.mxu0 %v1898_v31  ;;  %1757 = vmatpush3.bf16.msra.mxu1 %v1897_v32 }
  0x4e   :  { %1758 = vmatprep.subr.bf16.mxu1 %v1899_v33 }
  0x50   :  { %1737 = vmatpush3.bf16.msra.mxu0 %v1900_v34 }
  0x51   :  { %1738 = vmatprep.subr.bf16.mxu0 %v1902_v35  ;;  %1759 = vmatpush3.bf16.msra.mxu1 %v1901_v36 }
  0x52   :  { %1760 = vmatprep.subr.bf16.mxu1 %v1903_v37 }
  0x54   :  { %1739 = vmatpush3.bf16.msra.mxu0 %v1904_v38 }
  0x55   :  { %1740 = vmatprep.subr.bf16.mxu0 %v1906_v39  ;;  %1761 = vmatpush3.bf16.msra.mxu1 %v1905_v40 }
  0x56   :  { %1762 = vmatprep.subr.bf16.mxu1 %v1907_v42 }
  0x58   :  { %1741 = vmatpush3.bf16.msra.mxu0 %v1908_v43 }
  0x59   :  { %1742 = vmatprep.subr.bf16.mxu0 %v1910_v44  ;;  %1763 = vmatpush3.bf16.msra.mxu1 %v1909_v46 }
  0x5a   :  { %1764 = vmatprep.subr.bf16.mxu1 %v1911_v49 }
  0x5c   :  { %1743 = vmatpush3.bf16.msra.mxu0 %v1912_v50 }
  0x5d   :  { %1744 = vmatprep.subr.bf16.mxu0 %v1914_v53  ;;  %1765 = vmatpush3.bf16.msra.mxu1 %v1913_v54 }
  0x5e   :  { %1766 = vmatprep.subr.bf16.mxu1 %v1915_v57 }
  0x60   :  { %1745 = vmatpush3.bf16.msra.mxu0 %v1916_v58 }
  0x61   :  { %1774 = vmatprep.subr.bf16.mxu0 %v1918_v61  ;;  %1767 = vmatpush3.bf16.msra.mxu1 %v1917_v62 }
  0x62   :  { %1796 = vmatprep.subr.bf16.mxu1 %v1919_v0 }
  0x63   :  { %1357 = vmatmul.mubr.bf16.vlgmr.msra.gmra.mrb[8].mxu0 %v354_v60 }
  0x64   :  { %1775 = vmatpush3.bf16.msra.mxu0 %v1920_v1  ;;  %1436 = vmatprep.mubr.bf16.mxu0 %v375_v63 }
  0x65   :  { %1397 = vmatmul.mubr.bf16.vlgmr.msra.gmra.mrb[8].mxu1 %v376_v2  ;;  %1776 = vmatprep.subr.bf16.mxu0 %v1922_v3 }
  0x66   :  { %1797 = vmatpush3.bf16.msra.mxu1 %v1921_v4  ;;  %1476 = vmatprep.mubr.bf16.mxu1 %v379_v5 }
  0x67   :  { %1798 = vmatprep.subr.bf16.mxu1 %v1923_v6 }
  0x68   :  { %1777 = vmatpush3.bf16.msra.mxu0 %v1924_v7 }
  0x69   :  { %1778 = vmatprep.subr.bf16.mxu0 %v1926_v8 }
  0x6a   :  { %1799 = vmatpush3.bf16.msra.mxu1 %v1925_v9 }
  0x6b   :  { %1800 = vmatprep.subr.bf16.mxu1 %v1927_v10 }
  0x6c   :  { %1779 = vmatpush3.bf16.msra.mxu0 %v1928_v11 }
  0x6d   :  { %1780 = vmatprep.subr.bf16.mxu0 %v1930_v12 }
  0x6e   :  { %1801 = vmatpush3.bf16.msra.mxu1 %v1929_v13 }
  0x6f   :  { %1802 = vmatprep.subr.bf16.mxu1 %v1931_v14 }
  0x70   :  { %1781 = vmatpush3.bf16.msra.mxu0 %v1932_v15 }
  0x71   :  { %1782 = vmatprep.subr.bf16.mxu0 %v1934_v16 }
  0x72   :  { %1803 = vmatpush3.bf16.msra.mxu1 %v1933_v17 }
  0x73   :  { %1804 = vmatprep.subr.bf16.mxu1 %v1935_v18 }
  0x74   :  { %1783 = vmatpush3.bf16.msra.mxu0 %v1936_v19 }
  0x75   :  { %1784 = vmatprep.subr.bf16.mxu0 %v1938_v20 }
  0x76   :  { %8 = vsyncpa [#allocation4], 0  ;;  %1805 = vmatpush3.bf16.msra.mxu1 %v1937_v21  ;;  %v1941_v25 = vld [vmem:[%s2428_s1 + $0x3a8] sm:$0xff]   ;;  %v1943_v26 = vld [vmem:[%s2428_s1 + $0x3f0] sm:$0xff]   ;;  %v361_v32 = vrot.slane %v2292_v52, %v2103_v41  ;;  %v1976_v35 = vmov 0.0   ;;  %s1977_s27 = smov [#allocation3]  }
  0x77   :  { %1806 = vmatprep.subr.bf16.mxu1 %v1939_v22  ;;  %v1944_v27 = vld [vmem:[%s2428_s1 + $0x330] sm:$0xff]   ;;  %v1946_v28 = vld [vmem:[%s2428_s1 + $0x378] sm:$0xff]   ;;  %20 = vst [vmem:[#allocation2] sm:$0x3] %v1976_v35  ;;  %v1641_v21 = vld [vmem:[%s2429_s2] ss:$0 sm:$0xff] }
  0x78   :  { %1785 = vmatpush3.bf16.msra.mxu0 %v1940_v23  ;;  %v1945_v29 = vld [vmem:[%s2428_s1 + $0x3b0] sm:$0xff]   ;;  %v1947_v30 = vld [vmem:[%s2428_s1 + $0x3f8] sm:$0xff]   ;;  %v377_v34 = vcombine.high %v361_v32, %v361_v32  ;;  %s1505_s28 = sshll.u32 %s1977_s27, 4  ;;  %s1506_s28 = int_to_ptr.vmem [resolvable:$true] %s1505_s28 }
  0x79   :  { %1786 = vmatprep.subr.bf16.mxu0 %v1942_v24  ;;  %v1948_v31 = vld [vmem:[%s2428_s1 + $0x338] sm:$0xff]   ;;  %s1951_s29 = scalar_lea.vmem %s1506_s28, 32  ;;  %p1956_p1 = scmp.lt.s32.totalorder %s1506_s28, %s1506_s28 }
  0x7a   :  { %1807 = vmatpush3.bf16.msra.mxu1 %v1941_v25  ;;  %v1949_v33 = vld [vmem:[%s2428_s1 + $0x3b8] sm:$0xff]   ;;  %p1952_p0 = scmp.ne.s32.totalorder %s1506_s28, %s1951_s29  ;;  %p1957_p2 = scmp.lt.s32.totalorder %s1951_s29, %s1951_s29 }
  0x7b   :  { %1808 = vmatprep.subr.bf16.mxu1 %v1943_v26 }
  0x7c   :  { %1787 = vmatpush3.bf16.msra.mxu0 %v1944_v27  ;;  %p1958_p3 = por %p1957_p2, %p1956_p1 }
  0x7d   :  { %1788 = vmatprep.subr.bf16.mxu0 %v1946_v28 }
  0x7e   :  { %1809 = vmatpush3.bf16.msra.mxu1 %v1945_v29  ;;  %v21_v17 = vld [vmem:[#allocation2] sm:$0x3]  ;;  %p1959_p4 = pnand %p1958_p3, %p1952_p0 }
  0x7f   :  { %1810 = vmatprep.subr.bf16.mxu1 %v1947_v30 }
  0x80   :  { %1789 = vmatpush3.bf16.msra.mxu0 %v1948_v31 }
  0x82   :  { %1811 = vmatpush3.bf16.msra.mxu1 %v1949_v33 }
  0x83   :  { %1437 = vmatmul.mubr.bf16.vlgmr.msra.gmra.mrb[12].mxu0 %v361_v32 }
  0x85   :  { %1477 = vmatmul.mubr.bf16.vlgmr.msra.gmra.mrb[12].mxu1 %v377_v34 }
  0xf6   :  { %v1658_v36 = vpop.f32.mrb[0].mxu0 }
  0xf7   :  { %v1659_v37 = vpop.f32.mrb[1].mxu0  ;;  %v1680_v38 = vpop.f32.mrb[0].mxu1 }
  0xf8   :  { %v1660_v39 = vadd.f32 %v1659_v37, %v1658_v36  ;;  %v1661_v40 = vpop.f32.mrb[2].mxu0  ;;  %v1681_v42 = vpop.f32.mrb[1].mxu1 }
  0xf9   :  { %v1662_v41 = vpop.f32.mrb[3].mxu0  ;;  %v1682_v43 = vadd.f32 %v1681_v42, %v1680_v38  ;;  %v1683_v44 = vpop.f32.mrb[2].mxu1 }
  0xfa   :  { %v1684_v45 = vpop.f32.mrb[3].mxu1 }
  0xfb   :  { %v1239_v46 = vadd.f32 %v1682_v43, %v1660_v39 }
 0x116   :  { %v1702_v47 = vpop.f32.mrb[4].mxu0 }
 0x117   :  { %v1703_v48 = vpop.f32.mrb[5].mxu0  ;;  %v1724_v49 = vpop.f32.mrb[4].mxu1 }
 0x118   :  { %v1704_v50 = vadd.f32 %v1703_v48, %v1702_v47  ;;  %v1705_v51 = vpop.f32.mrb[6].mxu0  ;;  %v1725_v52 = vpop.f32.mrb[5].mxu1 }
 0x119   :  { %v1706_v53 = vpop.f32.mrb[7].mxu0  ;;  %v1726_v55 = vadd.f32 %v1725_v52, %v1724_v49  ;;  %v1727_v56 = vpop.f32.mrb[6].mxu1 }
 0x11a   :  { %v1279_v54 = vadd.f32 %v1704_v50, %v1239_v46  ;;  %v1728_v57 = vpop.f32.mrb[7].mxu1 }
 0x11c   :  { %v1319_v58 = vadd.f32 %v1726_v55, %v1279_v54 }
 0x136   :  { %v1746_v59 = vpop.f32.mrb[8].mxu0 }
 0x137   :  { %v1747_v60 = vpop.f32.mrb[9].mxu0 }
 0x138   :  { %v1768_v61 = vpop.f32.mrb[8].mxu1  ;;  %v1748_v62 = vadd.f32 %v1747_v60, %v1746_v59  ;;  %v1749_v63 = vpop.f32.mrb[10].mxu0 }
 0x139   :  { %v1769_v0 = vpop.f32.mrb[9].mxu1  ;;  %v1750_v1 = vpop.f32.mrb[11].mxu0 }
 0x13a   :  { %v1359_v2 = vadd.f32 %v1748_v62, %v1319_v58  ;;  %v1770_v3 = vadd.f32 %v1769_v0, %v1768_v61  ;;  %v1771_v4 = vpop.f32.mrb[10].mxu1 }
 0x13b   :  { %v1772_v5 = vpop.f32.mrb[11].mxu1 }
 0x13c   :  { %v1399_v6 = vadd.f32 %v1770_v3, %v1359_v2 }
 0x156   :  { %v1790_v7 = vpop.f32.mrb[12].mxu0 }
 0x157   :  { %v1791_v8 = vpop.f32.mrb[13].mxu0 }
 0x158   :  { %v1812_v9 = vpop.f32.mrb[12].mxu1  ;;  %v1792_v10 = vadd.f32 %v1791_v8, %v1790_v7  ;;  %v1793_v11 = vpop.f32.mrb[14].mxu0 }
 0x159   :  { %v1813_v12 = vpop.f32.mrb[13].mxu1  ;;  %v1794_v13 = vpop.f32.mrb[15].mxu0 }
 0x15a   :  { %v1439_v14 = vadd.f32 %v1792_v10, %v1399_v6  ;;  %v1814_v15 = vadd.f32 %v1813_v12, %v1812_v9  ;;  %v1815_v16 = vpop.f32.mrb[14].mxu1 }
 0x15b   :  { %v1816_v18 = vpop.f32.mrb[15].mxu1 }
 0x15c   :  { %v1479_v19 = vadd.f32 %v1814_v15, %v1439_v14 }
 0x15e   :  { %v1484_v20 = vadd.f32 %v1479_v19, %v21_v17 }
 0x160   :  { %1485 = vst [vmem:[#allocation2] sm:$0x3] %v1484_v20 }
 0x167   :  { %v1489_v22 = vld [vmem:[#allocation2] sm:$0x3] }
 0x168   :  { %v1497_v23 = vadd.f32 %v1641_v21, %v1489_v22 }
 0x16a   :  { %1498 = vst [vmem:[#allocation3] sm:$0x3] %v1497_v23 }
 0x16b   :  { %1962 = shalt.err (!%p1959_p4)
}
 0x16c   :  { %s1963_s5 = scalar_lea.hbm %s2430_s3, 32 }
 0x16d   :  { %p1964_p5 = scmp.ne.s32.totalorder %s2430_s3, %s1963_s5  ;;  %p1967_p6 = scmp.lt.u32.totalorder %s1963_s5, %s2430_s3 }
 0x16f   :  { %p1969_p7 = pnand %p1967_p6, %p1964_p5 }
 0x171   :  { %1972 = shalt.err (!%p1969_p7)
}
 0x172   :  { %1508 = dma.vmem_to_hbm [thread:$0]  %s1506_s28, 32, %s2430_s3, [#allocation4]  }
 0x173   :  { %1973 = dma.done.wait [#allocation4], 32  }
 0x174   :  { %1974 = vsyncadd [#allocation4], 4294967264 }
 0x175   :  { %1512 = vsyncpa [#allocation4], 1 }

</bundles_post_ra>
